<compile_context>
chip_gen: v6e
topology: v6e:2x2x1
jax: 0.10.0
libtpu: 0.0.40
codegen_flags: <defaults>
</compile_context>

<pallas_src>
from functools import partial

import jax
import jax.numpy as jnp
from jax import lax
from jax.experimental import pallas as pl
from jax.experimental.pallas import tpu as pltpu

EPS = 1e-5
LANE = 128


def _round_up(n, m):
    return (n + m - 1) // m * m


def _tpcnn_kernel(x_ref, wc_ref, wf_ref, gb_ref, y_ref, *, batch, hist, n_real):
    """x_ref:(T,P)  wc_ref:(F,T)  wf_ref:(F,P)  gb_ref:(F+1,2)  y_ref:(1,Bp).

    Lane layout is h-major: lane p = h*Bp + b.  Columns with b >= batch carry
    exactly-zero x / fc-weight, so every reduction below is unmasked.
    """
    P = x_ref.shape[1]        # padded lane count = hist * Bp
    Bp = y_ref.shape[1]       # padded batch lane count (multiple of 128)
    F = wc_ref.shape[0]

    # --- conv1 (ternary weights pre-quantized in wrapper): (F,T)@(T,P) MXU ---
    conv = jnp.dot(wc_ref[...], x_ref[...],
                   preferred_element_type=jnp.float32)                 # (F, P)

    # --- BatchNorm2d (training, biased): single-pass stats via one stacked
    #     MXU dot.  Padded lanes of conv are exactly 0, so no mask is needed.
    ones_p = jnp.ones((P, 1), jnp.float32)
    s1s2 = jnp.dot(jnp.concatenate([conv, conv * conv], axis=0), ones_p,
                   preferred_element_type=jnp.float32)                 # (2F, 1)
    inv_n = 1.0 / n_real
    m1 = s1s2[:F] * inv_n
    v1 = s1s2[F:] * inv_n - m1 * m1
    g1 = gb_ref[0:F, 0:1]
    b1 = gb_ref[0:F, 1:2]
    scale1 = g1 * lax.rsqrt(v1 + EPS)            # fold BN into scale/shift
    shift1 = b1 - m1 * scale1
    a = jnp.tanh(conv * scale1 + shift1)                               # (F, P)

    # --- fc: multiply with batch-tiled, batch-masked ternary fc weights, then
    #     collapse the filter axis on the MXU and the history axis with H-1
    #     aligned 128-lane VPU adds (h-major layout -> no group-sum matrix).
    prod = wf_ref[...] * a                      # (F, P); padded batch cols = 0
    col = jnp.dot(jnp.ones((1, F), jnp.float32), prod,
                  preferred_element_type=jnp.float32)                  # (1, P)
    fc = col[:, 0:Bp]
    for h in range(1, hist):                    # static unroll, aligned slices
        fc = fc + col[:, h * Bp:(h + 1) * Bp]                          # (1, Bp)

    # --- BatchNorm1d (training, biased) over the batch + sigmoid.  Exact
    #     two-pass form (matches the reference); padded columns excluded from
    #     the variance by one cheap (1, Bp) lane-iota compare.
    ones_b = jnp.ones((Bp, 1), jnp.float32)
    inv_b = 1.0 / batch
    m2 = jnp.dot(fc, ones_b, preferred_element_type=jnp.float32) * inv_b   # (1,1)
    lane_b = lax.broadcasted_iota(jnp.int32, (1, Bp), 1)
    d2 = jnp.where(lane_b < batch, fc - m2, 0.0)
    v2 = jnp.dot(d2 * d2, ones_b, preferred_element_type=jnp.float32) * inv_b
    g2 = gb_ref[F:F + 1, 0:1]
    b2 = gb_ref[F:F + 1, 1:2]
    scale2 = g2 * lax.rsqrt(v2 + EPS)
    shift2 = b2 - m2 * scale2
    # lane-dense store; columns >= batch are junk and sliced off by the wrapper
    y_ref[...] = jax.nn.sigmoid(fc * scale2 + shift2)                  # (1, Bp)


@jax.jit
def tpcnn_forward(x, params):
    """x: (B, table_size, history_len) float32 -> (B, 1) float32."""
    B, T, H = x.shape
    F = params["wc"].shape[0]
    # PyTorch BatchNorm1d (training) raises for batch size 1; mirror that here.
    assert B >= 2, "training-mode BatchNorm1d requires batch size >= 2"

    Bp = _round_up(B, LANE)          # padded batch lane count
    P = H * Bp                       # h-major padded lane count
    n_real = B * H

    # Ternary quantization hoisted out of the kernel (exact, fused under jit).
    # TODO(synk): cast wcq/wf_tiled (exact for {-1,0,1}) and x to bf16 for
    # full-rate MXU once batch is large enough that conv stops being
    # overhead-bound; kept f32 here to preserve the 1e-4/2e-5 tolerance.
    q = jnp.abs(params["q"])
    tq = lambda w: jnp.where(w > q, 1.0,
                             jnp.where(w < -q, -1.0, 0.0)).astype(jnp.float32)
    wcq = tq(params["wc"])                                   # (F, T)
    wfq = tq(params["wf"]).reshape(F, H)                     # (F, H) chan-major

    # Batch-tiled, batch-masked fc weight in h-major lane order: (F, H*Bp).
    bmask = (jnp.arange(Bp) < B).astype(jnp.float32)         # (Bp,)
    wf_tiled = (wfq[:, :, None] * bmask[None, None, :]).reshape(F, P)

    # x -> (T, H*Bp) with lane index h*Bp + b, zero-padded batch columns.
    # TODO(synk): this transpose+pad is one extra copy of x; ideally the
    # upstream producer would emit x directly in (T, H*Bpad) layout.
    x2d = jnp.pad(jnp.transpose(x, (1, 2, 0)),
                  ((0, 0), (0, 0), (0, Bp - B))).reshape(T, P)

    # BN affine params packed into a single VMEM input: rows 0..F-1 = (g1, b1),
    # row F = (g2, b2)  -> 4 kernel inputs instead of 7 (fewer DMA waits).
    gb = jnp.concatenate(
        [jnp.concatenate([params["g1"].reshape(F, 1),
                          params["b1"].reshape(F, 1)], axis=1),
         jnp.concatenate([params["g2"].reshape(1, 1),
                          params["b2"].reshape(1, 1)], axis=1)], axis=0)

    vmem = pl.BlockSpec(memory_space=pltpu.MemorySpace.VMEM)
    # TODO(synk): for very large batch, add a 2-wide "parallel" grid over lane
    # tiles with grid-accumulated sum/sumsq (two-phase BN) to use both v7x
    # TensorCores and set pltpu.CompilerParams(vmem_limit_bytes=...); at these
    # sizes a single block is the right choice.
    y = pl.pallas_call(
        partial(_tpcnn_kernel, batch=B, hist=H, n_real=n_real),
        out_shape=jax.ShapeDtypeStruct((1, Bp), jnp.float32),
        in_specs=[vmem, vmem, vmem, vmem],
        out_specs=vmem,
    )(x2d, wcq, wf_tiled, gb)
    return y[:, :B].reshape(B, 1)


def tpcnn_reference(x, params):
    """Pure-JAX reference matching the PyTorch forward (training-mode BN)."""
    B, T, H = x.shape
    F = params["wc"].shape[0]
    q = jnp.abs(params["q"])
    tq = lambda w: jnp.where(w > q, 1.0, jnp.where(w < -q, -1.0, 0.0))

    wcq = tq(params["wc"])                                   # (F, T)
    conv = jnp.einsum("ft,bth->bfh", wcq, x)                 # (B, F, H)
    m1 = jnp.mean(conv, axis=(0, 2), keepdims=True)
    v1 = jnp.mean(jnp.square(conv - m1), axis=(0, 2), keepdims=True)
    a = jnp.tanh((conv - m1) / jnp.sqrt(v1 + EPS)
                 * params["g1"].reshape(1, F, 1) + params["b1"].reshape(1, F, 1))
    flat = a.reshape(B, F * H)                               # channel-major flatten
    wfq = tq(params["wf"])                                   # (1, F*H)
    fc = flat @ wfq.T                                        # (B, 1)
    m2 = jnp.mean(fc)
    v2 = jnp.mean(jnp.square(fc - m2))
    return jax.nn.sigmoid((fc - m2) / jnp.sqrt(v2 + EPS)
                          * params["g2"].reshape(1, 1) + params["b2"].reshape(1, 1))


def init_params(key, table_size, num_filters, history_len):
    k_wc, k_wf = jax.random.split(key)
    return {
        # spread weights so the ternary quantizer (threshold 0.8) is non-trivial
        "wc": jax.random.uniform(k_wc, (num_filters, table_size),
                                 jnp.float32, -2.0, 2.0),
        "wf": jax.random.uniform(k_wf, (1, num_filters * history_len),
                                 jnp.float32, -2.0, 2.0),
        # BatchNorm affine params at PyTorch defaults (gamma=1, beta=0)
        "g1": jnp.ones((num_filters, 1), jnp.float32),
        "b1": jnp.zeros((num_filters, 1), jnp.float32),
        "g2": jnp.ones((1,), jnp.float32),
        "b2": jnp.zeros((1,), jnp.float32),
        "q": jnp.full((1, 1), 0.8, jnp.float32),
        # "k" (=0.5) is only used by predict(), not forward()
    }
    # TODO(synk): in-place conv1.weight/fc.weight copy_ and BN running-stat
    # updates are stateful side effects with no functional output impact; the
    # quantization is applied functionally instead.


if __name__ == "__main__":
    # small shapes consistent with the module: (batch, table_size, history_len)
    B, T, F, H = 2, 256, 32, 8
    key = jax.random.PRNGKey(0)
    k_x, k_p = jax.random.split(key)
    x = jax.random.normal(k_x, (B, T, H), jnp.float32)
    params = init_params(k_p, T, F, H)

    y = jax.block_until_ready(tpcnn_forward(x, params))
    y_ref = jax.block_until_ready(tpcnn_reference(x, params))
    assert y.shape == (B, 1)
    assert jnp.allclose(y, y_ref, rtol=1e-4, atol=2e-5), (y, y_ref)
    print("KERNEL_OK")
</pallas_src>

<mosaic_0001>
module attributes {stable_mosaic.version = 11 : i64} {
  func.func @_tpcnn_kernel(%arg0: memref<256x1024xf32, #tpu.memory_space<vmem>>, %arg1: memref<32x256xf32, #tpu.memory_space<vmem>>, %arg2: memref<32x1024xf32, #tpu.memory_space<vmem>>, %arg3: memref<33x2xf32, #tpu.memory_space<vmem>>, %arg4: memref<1x128xf32, #tpu.memory_space<vmem>>) attributes {dimension_semantics = [], scalar_prefetch = 0 : i64, scratch_operands = 0 : i64, tpu.core_type = #tpu.core_type<tc>} {
    %c0 = arith.constant 0 : index
    %c0_0 = arith.constant 0 : index
    %0 = vector.load %arg1[%c0, %c0_0] : memref<32x256xf32, #tpu.memory_space<vmem>>, vector<32x256xf32>
    %c0_1 = arith.constant 0 : index
    %c0_2 = arith.constant 0 : index
    %1 = vector.load %arg0[%c0_1, %c0_2] : memref<256x1024xf32, #tpu.memory_space<vmem>>, vector<256x1024xf32>
    %cst = arith.constant dense<0.000000e+00> : vector<32x1024xf32>
    %2 = tpu.matmul %0, %1, %cst {dimension_numbers = #tpu.dot_dimension_numbers<[1], [0], [0], [1], [0, 0, 1, 1], [], []>} : vector<32x256xf32>, vector<256x1024xf32>, vector<32x1024xf32> -> vector<32x1024xf32>
    %cst_3 = arith.constant 1.000000e+00 : f32
    %3 = vector.broadcast %cst_3 : f32 to vector<1024x1xf32>
    %4 = arith.mulf %2, %2 : vector<32x1024xf32>
    %5 = tpu.concatenate %2, %4 in 0 : vector<32x1024xf32>, vector<32x1024xf32> -> vector<64x1024xf32>
    %cst_4 = arith.constant dense<0.000000e+00> : vector<64x1xf32>
    %6 = tpu.matmul %5, %3, %cst_4 {dimension_numbers = #tpu.dot_dimension_numbers<[1], [0], [0], [1], [0, 0, 1, 1], [], []>} : vector<64x1024xf32>, vector<1024x1xf32>, vector<64x1xf32> -> vector<64x1xf32>
    %7 = vector.extract_strided_slice %6 {offsets = [0, 0], sizes = [32, 1], strides = [1, 1]} : vector<64x1xf32> to vector<32x1xf32>
    %cst_5 = arith.constant 6.250000e-02 : f32
    %8 = vector.broadcast %cst_5 : f32 to vector<32x1xf32>
    %9 = arith.mulf %7, %8 : vector<32x1xf32>
    %10 = vector.extract_strided_slice %6 {offsets = [32, 0], sizes = [32, 1], strides = [1, 1]} : vector<64x1xf32> to vector<32x1xf32>
    %cst_6 = arith.constant 6.250000e-02 : f32
    %11 = vector.broadcast %cst_6 : f32 to vector<32x1xf32>
    %12 = arith.mulf %10, %11 : vector<32x1xf32>
    %13 = arith.mulf %9, %9 : vector<32x1xf32>
    %14 = arith.subf %12, %13 : vector<32x1xf32>
    %c0_7 = arith.constant 0 : index
    %c0_8 = arith.constant 0 : index
    %15 = vector.load %arg3[%c0_7, %c0_8] : memref<33x2xf32, #tpu.memory_space<vmem>>, vector<32x1xf32>
    %c0_9 = arith.constant 0 : index
    %c1 = arith.constant 1 : index
    %16 = vector.load %arg3[%c0_9, %c1] : memref<33x2xf32, #tpu.memory_space<vmem>>, vector<32x1xf32>
    %cst_10 = arith.constant 9.99999974E-6 : f32
    %17 = vector.broadcast %cst_10 : f32 to vector<32x1xf32>
    %18 = arith.addf %14, %17 : vector<32x1xf32>
    %19 = math.rsqrt %18 : vector<32x1xf32>
    %20 = arith.mulf %15, %19 : vector<32x1xf32>
    %21 = arith.mulf %9, %20 : vector<32x1xf32>
    %22 = arith.subf %16, %21 : vector<32x1xf32>
    %23 = vector.broadcast %20 : vector<32x1xf32> to vector<32x1024xf32>
    %24 = arith.mulf %2, %23 : vector<32x1024xf32>
    %25 = vector.broadcast %22 : vector<32x1xf32> to vector<32x1024xf32>
    %26 = arith.addf %24, %25 : vector<32x1024xf32>
    %27 = math.tanh %26 : vector<32x1024xf32>
    %c0_11 = arith.constant 0 : index
    %c0_12 = arith.constant 0 : index
    %28 = vector.load %arg2[%c0_11, %c0_12] : memref<32x1024xf32, #tpu.memory_space<vmem>>, vector<32x1024xf32>
    %29 = arith.mulf %28, %27 : vector<32x1024xf32>
    %cst_13 = arith.constant 1.000000e+00 : f32
    %30 = vector.broadcast %cst_13 : f32 to vector<1x32xf32>
    %cst_14 = arith.constant dense<0.000000e+00> : vector<1x1024xf32>
    %31 = tpu.matmul %30, %29, %cst_14 {dimension_numbers = #tpu.dot_dimension_numbers<[1], [0], [0], [1], [0, 0, 1, 1], [], []>} : vector<1x32xf32>, vector<32x1024xf32>, vector<1x1024xf32> -> vector<1x1024xf32>
    %32 = vector.extract_strided_slice %31 {offsets = [0, 0], sizes = [1, 128], strides = [1, 1]} : vector<1x1024xf32> to vector<1x128xf32>
    %33 = vector.extract_strided_slice %31 {offsets = [0, 128], sizes = [1, 128], strides = [1, 1]} : vector<1x1024xf32> to vector<1x128xf32>
    %34 = arith.addf %32, %33 : vector<1x128xf32>
    %35 = vector.extract_strided_slice %31 {offsets = [0, 256], sizes = [1, 128], strides = [1, 1]} : vector<1x1024xf32> to vector<1x128xf32>
    %36 = arith.addf %34, %35 : vector<1x128xf32>
    %37 = vector.extract_strided_slice %31 {offsets = [0, 384], sizes = [1, 128], strides = [1, 1]} : vector<1x1024xf32> to vector<1x128xf32>
    %38 = arith.addf %36, %37 : vector<1x128xf32>
    %39 = vector.extract_strided_slice %31 {offsets = [0, 512], sizes = [1, 128], strides = [1, 1]} : vector<1x1024xf32> to vector<1x128xf32>
    %40 = arith.addf %38, %39 : vector<1x128xf32>
    %41 = vector.extract_strided_slice %31 {offsets = [0, 640], sizes = [1, 128], strides = [1, 1]} : vector<1x1024xf32> to vector<1x128xf32>
    %42 = arith.addf %40, %41 : vector<1x128xf32>
    %43 = vector.extract_strided_slice %31 {offsets = [0, 768], sizes = [1, 128], strides = [1, 1]} : vector<1x1024xf32> to vector<1x128xf32>
    %44 = arith.addf %42, %43 : vector<1x128xf32>
    %45 = vector.extract_strided_slice %31 {offsets = [0, 896], sizes = [1, 128], strides = [1, 1]} : vector<1x1024xf32> to vector<1x128xf32>
    %46 = arith.addf %44, %45 : vector<1x128xf32>
    %cst_15 = arith.constant 1.000000e+00 : f32
    %47 = vector.broadcast %cst_15 : f32 to vector<128x1xf32>
    %cst_16 = arith.constant dense<0.000000e+00> : vector<1x1xf32>
    %48 = tpu.matmul %46, %47, %cst_16 {dimension_numbers = #tpu.dot_dimension_numbers<[1], [0], [0], [1], [0, 0, 1, 1], [], []>} : vector<1x128xf32>, vector<128x1xf32>, vector<1x1xf32> -> vector<1x1xf32>
    %cst_17 = arith.constant 5.000000e-01 : f32
    %49 = vector.broadcast %cst_17 : f32 to vector<1x1xf32>
    %50 = arith.mulf %48, %49 : vector<1x1xf32>
    %51 = tpu.iota {dimensions = array<i32: 1>} : vector<1x128xi32>
    %c2_i32 = arith.constant 2 : i32
    %52 = vector.broadcast %c2_i32 : i32 to vector<1x128xi32>
    %53 = arith.cmpi slt, %51, %52 : vector<1x128xi32>
    %54 = vector.broadcast %50 : vector<1x1xf32> to vector<1x128xf32>
    %55 = arith.subf %46, %54 : vector<1x128xf32>
    %cst_18 = arith.constant 0.000000e+00 : f32
    %56 = vector.broadcast %cst_18 : f32 to vector<1x128xf32>
    %57 = arith.select %53, %55, %56 : vector<1x128xi1>, vector<1x128xf32>
    %58 = arith.mulf %57, %57 : vector<1x128xf32>
    %cst_19 = arith.constant dense<0.000000e+00> : vector<1x1xf32>
    %59 = tpu.matmul %58, %47, %cst_19 {dimension_numbers = #tpu.dot_dimension_numbers<[1], [0], [0], [1], [0, 0, 1, 1], [], []>} : vector<1x128xf32>, vector<128x1xf32>, vector<1x1xf32> -> vector<1x1xf32>
    %cst_20 = arith.constant 5.000000e-01 : f32
    %60 = vector.broadcast %cst_20 : f32 to vector<1x1xf32>
    %61 = arith.mulf %59, %60 : vector<1x1xf32>
    %c32 = arith.constant 32 : index
    %c0_21 = arith.constant 0 : index
    %62 = vector.load %arg3[%c32, %c0_21] : memref<33x2xf32, #tpu.memory_space<vmem>>, vector<1x1xf32>
    %c32_22 = arith.constant 32 : index
    %c1_23 = arith.constant 1 : index
    %63 = vector.load %arg3[%c32_22, %c1_23] : memref<33x2xf32, #tpu.memory_space<vmem>>, vector<1x1xf32>
    %cst_24 = arith.constant 9.99999974E-6 : f32
    %64 = vector.broadcast %cst_24 : f32 to vector<1x1xf32>
    %65 = arith.addf %61, %64 : vector<1x1xf32>
    %66 = math.rsqrt %65 : vector<1x1xf32>
    %67 = arith.mulf %62, %66 : vector<1x1xf32>
    %68 = arith.mulf %50, %67 : vector<1x1xf32>
    %69 = arith.subf %63, %68 : vector<1x1xf32>
    %70 = vector.broadcast %67 : vector<1x1xf32> to vector<1x128xf32>
    %71 = arith.mulf %46, %70 : vector<1x128xf32>
    %72 = vector.broadcast %69 : vector<1x1xf32> to vector<1x128xf32>
    %73 = arith.addf %71, %72 : vector<1x128xf32>
    %74 = arith.negf %73 : vector<1x128xf32>
    %75 = math.exp %74 : vector<1x128xf32>
    %cst_25 = arith.constant 1.000000e+00 : f32
    %76 = vector.broadcast %cst_25 : f32 to vector<1x128xf32>
    %77 = arith.addf %76, %75 : vector<1x128xf32>
    %78 = arith.divf %76, %77 : vector<1x128xf32>
    %c0_26 = arith.constant 0 : index
    %c0_27 = arith.constant 0 : index
    %79 = vector.load %arg4[%c0_26, %c0_27] : memref<1x128xf32, #tpu.memory_space<vmem>>, vector<1x128xf32>
    tpu.vector_store %arg4[%c0_26, %c0_27], %78 {strides = array<i32>} : memref<1x128xf32, #tpu.memory_space<vmem>>, vector<1x128xf32>,
    return
  }
}

</mosaic_0001>

<bundles_post_ra>
// kernel: mul.8
= control target key start
LH: loop header
LB: loop body
LE: loop exit
PB: predicated region body
PF: predicated region fallthrough
CT: control target
= control target key end

     0   :  { %s131_s8 = smov 104   ;;  %s132_s9 = smov 112   ;;  %vm8_vm0 = vcmask 64512   ;;  %s222_s0 = inlined_call_operand.vmem [shape: f32[256], index: 0, kind: input, shape index: {}]   ;;  %s223_s1 = inlined_call_operand.vmem [shape: f32[32,8], index: 1, kind: output, shape index: {}]  }
   0x1   :  { %v5_v0 = vld [vmem:[%s222_s0] sm:$0x3]  ;;  %s130_s0 = smov 120   ;;  %s133_s10 = smov 96  }
   0x2   :  { %6 = vst [vmem:[#allocation0] sm:$0x3] %v5_v0  ;;  %s134_s11 = smov 88   ;;  %s135_s12 = smov 80  }
   0x3   :  { %s136_s13 = smov 72   ;;  %s137_s14 = smov 64  }
   0x4   :  { %s138_s17 = smov 56   ;;  %s139_s18 = smov 48  }
   0x5   :  { %s140_s19 = smov 40   ;;  %s141_s20 = smov 32  }
   0x6   :  { %s142_s21 = smov 24   ;;  %s143_s22 = smov 16  }
   0x7   :  { %s144_s23 = smov 8  }
   0x9   :  { %v10_v1 = vld [vmem:[#allocation0] sm:$0x3]  }
   0xa   :  { %v22_v2 = vld [vmem:[#allocation0] sm:$0x3]   ;;  %11 = vrot.lane.b32.xlu0 %v10_v1, %s130_s0 }
   0xb   :  { %23 = vrot.lane.b32.xlu1 %v22_v2, %s131_s8  ;;  %v16_v3 = vld [vmem:[#allocation0] sm:$0x3]  }
   0xc   :  { %v28_v4 = vld [vmem:[#allocation0] sm:$0x3]  }
   0xd   :  { %v34_v5 = vld [vmem:[#allocation0] sm:$0x3]  }
   0xe   :  { %17 = vrot.lane.b32.xlu0 %v16_v3, %s132_s9  ;;  %v40_v6 = vld [vmem:[#allocation0] sm:$0x3]  }
   0xf   :  { %29 = vrot.lane.b32.xlu1 %v28_v4, %s133_s10  ;;  %v46_v7 = vld [vmem:[#allocation0] sm:$0x3]  }
  0x10   :  { %v52_v8 = vld [vmem:[#allocation0] sm:$0x3]  }
  0x11   :  { %v58_v9 = vld [vmem:[#allocation0] sm:$0x3]  }
  0x12   :  { %35 = vrot.lane.b32.xlu0 %v34_v5, %s134_s11  ;;  %v64_v10 = vld [vmem:[#allocation0] sm:$0x3]  }
  0x13   :  { %41 = vrot.lane.b32.xlu1 %v40_v6, %s135_s12  ;;  %v7_v11 = vld [vmem:[#allocation0] sm:$0x3]  }
  0x14   :  { %9 = vst.msk [vmem:[%s223_s1] ss:$16 sm:$0x3] %vm8_vm0, %v7_v11   ;;  %v70_v12 = vld [vmem:[#allocation0] sm:$0x3]  }
  0x15   :  { %v76_v13 = vld [vmem:[#allocation0] sm:$0x3]  }
  0x16   :  { %47 = vrot.lane.b32.xlu0 %v46_v7, %s136_s13  ;;  %v82_v14 = vld [vmem:[#allocation0] sm:$0x3]  }
  0x17   :  { %53 = vrot.lane.b32.xlu1 %v52_v8, %s137_s14  ;;  %v88_v15 = vld [vmem:[#allocation0] sm:$0x3]  }
  0x18   :  { %v94_v16 = vld [vmem:[#allocation0] sm:$0x3]  }
  0x1a   :  { %59 = vrot.lane.b32.xlu0 %v58_v9, %s138_s17 }
  0x1b   :  { %65 = vrot.lane.b32.xlu1 %v64_v10, %s139_s18 }
  0x1e   :  { %71 = vrot.lane.b32.xlu0 %v70_v12, %s140_s19 }
  0x1f   :  { %77 = vrot.lane.b32.xlu1 %v76_v13, %s141_s20 }
  0x22   :  { %83 = vrot.lane.b32.xlu0 %v82_v14, %s142_s21 }
  0x23   :  { %89 = vrot.lane.b32.xlu1 %v88_v15, %s143_s22 }
  0x26   :  { %95 = vrot.lane.b32.xlu0 %v94_v16, %s144_s23 }
  0x7c   :  { %v12_v17 = vpop.permute.xlu0 %11  }
  0x7d   :  { %v24_v18 = vpop.permute.xlu1 %23   ;;  %100 = vst.msk [vmem:[%s223_s1 + $0x1] ss:$16 sm:$0x3] %vm8_vm0, %v12_v17  }
  0x7e   :  { %102 = vst.msk [vmem:[%s223_s1 + $0x3] ss:$16 sm:$0x3] %vm8_vm0, %v24_v18  }
  0x80   :  { %v18_v19 = vpop.permute.xlu0 %17  }
  0x81   :  { %v30_v20 = vpop.permute.xlu1 %29   ;;  %101 = vst.msk [vmem:[%s223_s1 + $0x2] ss:$16 sm:$0x3] %vm8_vm0, %v18_v19  }
  0x82   :  { %103 = vst.msk [vmem:[%s223_s1 + $0x4] ss:$16 sm:$0x3] %vm8_vm0, %v30_v20  }
  0x84   :  { %v36_v21 = vpop.permute.xlu0 %35  }
  0x85   :  { %v42_v22 = vpop.permute.xlu1 %41   ;;  %104 = vst.msk [vmem:[%s223_s1 + $0x5] ss:$16 sm:$0x3] %vm8_vm0, %v36_v21  }
  0x86   :  { %105 = vst.msk [vmem:[%s223_s1 + $0x6] ss:$16 sm:$0x3] %vm8_vm0, %v42_v22  }
  0x88   :  { %v48_v23 = vpop.permute.xlu0 %47  }
  0x89   :  { %v54_v24 = vpop.permute.xlu1 %53   ;;  %106 = vst.msk [vmem:[%s223_s1 + $0x7] ss:$16 sm:$0x3] %vm8_vm0, %v48_v23  }
  0x8a   :  { %107 = vst.msk [vmem:[%s223_s1 + $0x8] ss:$16 sm:$0x3] %vm8_vm0, %v54_v24  }
  0x8c   :  { %v60_v25 = vpop.permute.xlu0 %59  }
  0x8d   :  { %v66_v26 = vpop.permute.xlu1 %65   ;;  %108 = vst.msk [vmem:[%s223_s1 + $0x9] ss:$16 sm:$0x3] %vm8_vm0, %v60_v25  }
  0x8e   :  { %109 = vst.msk [vmem:[%s223_s1 + $0xa] ss:$16 sm:$0x3] %vm8_vm0, %v66_v26  }
  0x90   :  { %v72_v27 = vpop.permute.xlu0 %71  }
  0x91   :  { %v78_v28 = vpop.permute.xlu1 %77   ;;  %110 = vst.msk [vmem:[%s223_s1 + $0xb] ss:$16 sm:$0x3] %vm8_vm0, %v72_v27  }
  0x92   :  { %111 = vst.msk [vmem:[%s223_s1 + $0xc] ss:$16 sm:$0x3] %vm8_vm0, %v78_v28  }
  0x94   :  { %v84_v29 = vpop.permute.xlu0 %83  }
  0x95   :  { %v90_v30 = vpop.permute.xlu1 %89   ;;  %112 = vst.msk [vmem:[%s223_s1 + $0xd] ss:$16 sm:$0x3] %vm8_vm0, %v84_v29  }
  0x96   :  { %113 = vst.msk [vmem:[%s223_s1 + $0xe] ss:$16 sm:$0x3] %vm8_vm0, %v90_v30  }
  0x98   :  { %v96_v31 = vpop.permute.xlu0 %95  }
  0x99   :  { %114 = vst.msk [vmem:[%s223_s1 + $0xf] ss:$16 sm:$0x3] %vm8_vm0, %v96_v31  }

// kernel: tpcnn_forward.1
= control target key start
LH: loop header
LB: loop body
LE: loop exit
PB: predicated region body
PF: predicated region fallthrough
CT: control target
= control target key end

     0   :  { %s2253_s18 = smov 1   ;;  %vm1345_vm0 = vcmask 261120   ;;  %vm2256_vm1 = vmmov 0   ;;  %s3760_s0 = inlined_call_operand.vmem [shape: f32[256,1024], index: 0, kind: input, shape index: {}]   ;;  %s3761_s1 = inlined_call_operand.vmem [shape: f32[32,256], index: 1, kind: input, shape index: {}]   ;;  %s3762_s3 = inlined_call_operand.vmem [shape: f32[33,2], index: 3, kind: input, shape index: {}]   ;;  %s3763_s2 = inlined_call_operand.vmem [shape: f32[32,1024], index: 2, kind: input, shape index: {}]   ;;  %s3764_s4 = inlined_call_operand.vmem [shape: f32[1,128], index: 4, kind: output, shape index: {}]  }
   0x1   :  { %v146_v0 = vld [vmem:[%s3760_s0 + $0x3c8] sm:$0xff]  ;;  %v148_v1 = vld [vmem:[%s3760_s0 + $0x3d8] sm:$0xff]  ;;  %v145_v2 = vld [vmem:[%s3760_s0 + $0x3c0] sm:$0xff] }
   0x2   :  { %281 = vmatprep.subr.mxu0 %v146_v0  ;;  %370 = vmatprep.subr.mxu1 %v148_v1  ;;  %v147_v3 = vld [vmem:[%s3760_s0 + $0x3d0] sm:$0xff]  ;;  %v138_v4 = vld [vmem:[%s3760_s0 + $0x388] sm:$0xff]  ;;  %v140_v5 = vld [vmem:[%s3760_s0 + $0x398] sm:$0xff] }
   0x3   :  { %282 = vmatpush1.msra.mxu0 %v145_v2  ;;  %371 = vmatpush1.msra.mxu1 %v147_v3  ;;  %v137_v6 = vld [vmem:[%s3760_s0 + $0x380] sm:$0xff]  ;;  %v139_v7 = vld [vmem:[%s3760_s0 + $0x390] sm:$0xff]  ;;  %v130_v8 = vld [vmem:[%s3760_s0 + $0x348] sm:$0xff] }
   0x4   :  { %283 = vmatprep.subr.mxu0 %v138_v4  ;;  %372 = vmatprep.subr.mxu1 %v140_v5  ;;  %v132_v9 = vld [vmem:[%s3760_s0 + $0x358] sm:$0xff]  ;;  %v129_v10 = vld [vmem:[%s3760_s0 + $0x340] sm:$0xff]  ;;  %v131_v11 = vld [vmem:[%s3760_s0 + $0x350] sm:$0xff] }
   0x5   :  { %284 = vmatpush1.msra.mxu0 %v137_v6  ;;  %373 = vmatpush1.msra.mxu1 %v139_v7  ;;  %v122_v12 = vld [vmem:[%s3760_s0 + $0x308] sm:$0xff]  ;;  %v124_v13 = vld [vmem:[%s3760_s0 + $0x318] sm:$0xff]  ;;  %v121_v14 = vld [vmem:[%s3760_s0 + $0x300] sm:$0xff] }
   0x6   :  { %285 = vmatprep.subr.mxu0 %v130_v8  ;;  %374 = vmatprep.subr.mxu1 %v132_v9  ;;  %v123_v15 = vld [vmem:[%s3760_s0 + $0x310] sm:$0xff]  ;;  %v114_v16 = vld [vmem:[%s3760_s0 + $0x2c8] sm:$0xff]  ;;  %v116_v17 = vld [vmem:[%s3760_s0 + $0x2d8] sm:$0xff] }
   0x7   :  { %286 = vmatpush1.msra.mxu0 %v129_v10  ;;  %375 = vmatpush1.msra.mxu1 %v131_v11  ;;  %v113_v18 = vld [vmem:[%s3760_s0 + $0x2c0] sm:$0xff]  ;;  %v115_v19 = vld [vmem:[%s3760_s0 + $0x2d0] sm:$0xff]  ;;  %v106_v20 = vld [vmem:[%s3760_s0 + $0x288] sm:$0xff] }
   0x8   :  { %287 = vmatprep.subr.mxu0 %v122_v12  ;;  %376 = vmatprep.subr.mxu1 %v124_v13  ;;  %v108_v21 = vld [vmem:[%s3760_s0 + $0x298] sm:$0xff]  ;;  %v105_v22 = vld [vmem:[%s3760_s0 + $0x280] sm:$0xff]  ;;  %v107_v23 = vld [vmem:[%s3760_s0 + $0x290] sm:$0xff] }
   0x9   :  { %288 = vmatpush1.msra.mxu0 %v121_v14  ;;  %377 = vmatpush1.msra.mxu1 %v123_v15  ;;  %v98_v24 = vld [vmem:[%s3760_s0 + $0x248] sm:$0xff]  ;;  %v100_v25 = vld [vmem:[%s3760_s0 + $0x258] sm:$0xff]  ;;  %v97_v26 = vld [vmem:[%s3760_s0 + $0x240] sm:$0xff] }
   0xa   :  { %289 = vmatprep.subr.mxu0 %v114_v16  ;;  %378 = vmatprep.subr.mxu1 %v116_v17  ;;  %v99_v27 = vld [vmem:[%s3760_s0 + $0x250] sm:$0xff]  ;;  %v90_v28 = vld [vmem:[%s3760_s0 + $0x208] sm:$0xff]  ;;  %v92_v29 = vld [vmem:[%s3760_s0 + $0x218] sm:$0xff] }
   0xb   :  { %290 = vmatpush1.msra.mxu0 %v113_v18  ;;  %379 = vmatpush1.msra.mxu1 %v115_v19  ;;  %v89_v30 = vld [vmem:[%s3760_s0 + $0x200] sm:$0xff]  ;;  %v91_v31 = vld [vmem:[%s3760_s0 + $0x210] sm:$0xff]  ;;  %v82_v32 = vld [vmem:[%s3760_s0 + $0x1c8] sm:$0xff] }
   0xc   :  { %291 = vmatprep.subr.mxu0 %v106_v20  ;;  %380 = vmatprep.subr.mxu1 %v108_v21  ;;  %v84_v33 = vld [vmem:[%s3760_s0 + $0x1d8] sm:$0xff]  ;;  %v81_v34 = vld [vmem:[%s3760_s0 + $0x1c0] sm:$0xff]  ;;  %v83_v35 = vld [vmem:[%s3760_s0 + $0x1d0] sm:$0xff] }
   0xd   :  { %292 = vmatpush1.msra.mxu0 %v105_v22  ;;  %381 = vmatpush1.msra.mxu1 %v107_v23  ;;  %v74_v36 = vld [vmem:[%s3760_s0 + $0x188] sm:$0xff]  ;;  %v76_v37 = vld [vmem:[%s3760_s0 + $0x198] sm:$0xff]  ;;  %v73_v38 = vld [vmem:[%s3760_s0 + $0x180] sm:$0xff] }
   0xe   :  { %293 = vmatprep.subr.mxu0 %v98_v24  ;;  %382 = vmatprep.subr.mxu1 %v100_v25  ;;  %v75_v39 = vld [vmem:[%s3760_s0 + $0x190] sm:$0xff]  ;;  %v66_v40 = vld [vmem:[%s3760_s0 + $0x148] sm:$0xff]  ;;  %v68_v41 = vld [vmem:[%s3760_s0 + $0x158] sm:$0xff] }
   0xf   :  { %294 = vmatpush1.msra.mxu0 %v97_v26  ;;  %383 = vmatpush1.msra.mxu1 %v99_v27  ;;  %v65_v42 = vld [vmem:[%s3760_s0 + $0x140] sm:$0xff]  ;;  %v67_v43 = vld [vmem:[%s3760_s0 + $0x150] sm:$0xff]  ;;  %v58_v44 = vld [vmem:[%s3760_s0 + $0x108] sm:$0xff] }
  0x10   :  { %295 = vmatprep.subr.mxu0 %v90_v28  ;;  %384 = vmatprep.subr.mxu1 %v92_v29  ;;  %v60_v45 = vld [vmem:[%s3760_s0 + $0x118] sm:$0xff]  ;;  %v57_v46 = vld [vmem:[%s3760_s0 + $0x100] sm:$0xff]  ;;  %v59_v47 = vld [vmem:[%s3760_s0 + $0x110] sm:$0xff] }
  0x11   :  { %296 = vmatpush1.msra.mxu0 %v89_v30  ;;  %385 = vmatpush1.msra.mxu1 %v91_v31  ;;  %v50_v48 = vld [vmem:[%s3760_s0 + $0xc8] sm:$0xff]  ;;  %v52_v49 = vld [vmem:[%s3760_s0 + $0xd8] sm:$0xff]  ;;  %v49_v50 = vld [vmem:[%s3760_s0 + $0xc0] sm:$0xff] }
  0x12   :  { %297 = vmatprep.subr.mxu0 %v82_v32  ;;  %386 = vmatprep.subr.mxu1 %v84_v33  ;;  %v51_v51 = vld [vmem:[%s3760_s0 + $0xd0] sm:$0xff]  ;;  %v42_v52 = vld [vmem:[%s3760_s0 + $0x88] sm:$0xff]  ;;  %v44_v53 = vld [vmem:[%s3760_s0 + $0x98] sm:$0xff] }
  0x13   :  { %298 = vmatpush1.msra.mxu0 %v81_v34  ;;  %387 = vmatpush1.msra.mxu1 %v83_v35  ;;  %v41_v54 = vld [vmem:[%s3760_s0 + $0x80] sm:$0xff]  ;;  %v43_v55 = vld [vmem:[%s3760_s0 + $0x90] sm:$0xff]  ;;  %v34_v56 = vld [vmem:[%s3760_s0 + $0x48] sm:$0xff] }
  0x14   :  { %299 = vmatprep.subr.mxu0 %v74_v36  ;;  %388 = vmatprep.subr.mxu1 %v76_v37  ;;  %v36_v57 = vld [vmem:[%s3760_s0 + $0x58] sm:$0xff]  ;;  %v33_v58 = vld [vmem:[%s3760_s0 + $0x40] sm:$0xff]  ;;  %v35_v59 = vld [vmem:[%s3760_s0 + $0x50] sm:$0xff] }
  0x15   :  { %300 = vmatpush1.msra.mxu0 %v73_v38  ;;  %389 = vmatpush1.msra.mxu1 %v75_v39  ;;  %v26_v60 = vld [vmem:[%s3760_s0 + $0x8] sm:$0xff]  ;;  %v28_v61 = vld [vmem:[%s3760_s0 + $0x18] sm:$0xff]  ;;  %v25_v62 = vld [vmem:[%s3760_s0] sm:$0xff] }
  0x16   :  { %301 = vmatprep.subr.mxu0 %v66_v40  ;;  %390 = vmatprep.subr.mxu1 %v68_v41  ;;  %v27_v63 = vld [vmem:[%s3760_s0 + $0x10] sm:$0xff]  ;;  %v274_v0 = vld [vmem:[%s3760_s0 + $0x7c8] sm:$0xff]  ;;  %v276_v1 = vld [vmem:[%s3760_s0 + $0x7d8] sm:$0xff] }
  0x17   :  { %302 = vmatpush1.msra.mxu0 %v65_v42  ;;  %391 = vmatpush1.msra.mxu1 %v67_v43  ;;  %v273_v2 = vld [vmem:[%s3760_s0 + $0x7c0] sm:$0xff]  ;;  %v275_v3 = vld [vmem:[%s3760_s0 + $0x7d0] sm:$0xff]  ;;  %v266_v4 = vld [vmem:[%s3760_s0 + $0x788] sm:$0xff] }
  0x18   :  { %303 = vmatprep.subr.mxu0 %v58_v44  ;;  %392 = vmatprep.subr.mxu1 %v60_v45  ;;  %v268_v5 = vld [vmem:[%s3760_s0 + $0x798] sm:$0xff]  ;;  %v265_v6 = vld [vmem:[%s3760_s0 + $0x780] sm:$0xff]  ;;  %v267_v7 = vld [vmem:[%s3760_s0 + $0x790] sm:$0xff] }
  0x19   :  { %304 = vmatpush1.msra.mxu0 %v57_v46  ;;  %393 = vmatpush1.msra.mxu1 %v59_v47  ;;  %v258_v8 = vld [vmem:[%s3760_s0 + $0x748] sm:$0xff]  ;;  %v260_v9 = vld [vmem:[%s3760_s0 + $0x758] sm:$0xff]  ;;  %v257_v10 = vld [vmem:[%s3760_s0 + $0x740] sm:$0xff] }
  0x1a   :  { %305 = vmatprep.subr.mxu0 %v50_v48  ;;  %394 = vmatprep.subr.mxu1 %v52_v49  ;;  %v259_v11 = vld [vmem:[%s3760_s0 + $0x750] sm:$0xff]  ;;  %v250_v12 = vld [vmem:[%s3760_s0 + $0x708] sm:$0xff]  ;;  %v252_v13 = vld [vmem:[%s3760_s0 + $0x718] sm:$0xff] }
  0x1b   :  { %306 = vmatpush1.msra.mxu0 %v49_v50  ;;  %395 = vmatpush1.msra.mxu1 %v51_v51  ;;  %v249_v14 = vld [vmem:[%s3760_s0 + $0x700] sm:$0xff]  ;;  %v251_v15 = vld [vmem:[%s3760_s0 + $0x710] sm:$0xff]  ;;  %v242_v16 = vld [vmem:[%s3760_s0 + $0x6c8] sm:$0xff] }
  0x1c   :  { %307 = vmatprep.subr.mxu0 %v42_v52  ;;  %396 = vmatprep.subr.mxu1 %v44_v53  ;;  %v244_v17 = vld [vmem:[%s3760_s0 + $0x6d8] sm:$0xff]  ;;  %v241_v18 = vld [vmem:[%s3760_s0 + $0x6c0] sm:$0xff]  ;;  %v243_v19 = vld [vmem:[%s3760_s0 + $0x6d0] sm:$0xff] }
  0x1d   :  { %308 = vmatpush1.msra.mxu0 %v41_v54  ;;  %397 = vmatpush1.msra.mxu1 %v43_v55  ;;  %v234_v20 = vld [vmem:[%s3760_s0 + $0x688] sm:$0xff]  ;;  %v236_v21 = vld [vmem:[%s3760_s0 + $0x698] sm:$0xff]  ;;  %v233_v22 = vld [vmem:[%s3760_s0 + $0x680] sm:$0xff] }
  0x1e   :  { %309 = vmatprep.subr.mxu0 %v34_v56  ;;  %398 = vmatprep.subr.mxu1 %v36_v57  ;;  %v235_v23 = vld [vmem:[%s3760_s0 + $0x690] sm:$0xff]  ;;  %v226_v24 = vld [vmem:[%s3760_s0 + $0x648] sm:$0xff]  ;;  %v228_v25 = vld [vmem:[%s3760_s0 + $0x658] sm:$0xff] }
  0x1f   :  { %310 = vmatpush1.msra.mxu0 %v33_v58  ;;  %399 = vmatpush1.msra.mxu1 %v35_v59  ;;  %v225_v26 = vld [vmem:[%s3760_s0 + $0x640] sm:$0xff]  ;;  %v227_v27 = vld [vmem:[%s3760_s0 + $0x650] sm:$0xff]  ;;  %v218_v28 = vld [vmem:[%s3760_s0 + $0x608] sm:$0xff] }
  0x20   :  { %311 = vmatprep.subr.mxu0 %v26_v60  ;;  %400 = vmatprep.subr.mxu1 %v28_v61  ;;  %v220_v29 = vld [vmem:[%s3760_s0 + $0x618] sm:$0xff]  ;;  %v217_v30 = vld [vmem:[%s3760_s0 + $0x600] sm:$0xff]  ;;  %v219_v31 = vld [vmem:[%s3760_s0 + $0x610] sm:$0xff] }
  0x21   :  { %312 = vmatpush1.msra.mxu0 %v25_v62  ;;  %401 = vmatpush1.msra.mxu1 %v27_v63  ;;  %v210_v32 = vld [vmem:[%s3760_s0 + $0x5c8] sm:$0xff]  ;;  %v212_v33 = vld [vmem:[%s3760_s0 + $0x5d8] sm:$0xff]  ;;  %v209_v34 = vld [vmem:[%s3760_s0 + $0x5c0] sm:$0xff] }
  0x22   :  { %313 = vmatprep.subr.mxu0 %v274_v0  ;;  %402 = vmatprep.subr.mxu1 %v276_v1  ;;  %v211_v35 = vld [vmem:[%s3760_s0 + $0x5d0] sm:$0xff]  ;;  %v202_v36 = vld [vmem:[%s3760_s0 + $0x588] sm:$0xff]  ;;  %v204_v37 = vld [vmem:[%s3760_s0 + $0x598] sm:$0xff] }
  0x23   :  { %314 = vmatpush2.msra.mxu0 %v273_v2  ;;  %403 = vmatpush2.msra.mxu1 %v275_v3  ;;  %v201_v38 = vld [vmem:[%s3760_s0 + $0x580] sm:$0xff]  ;;  %v203_v39 = vld [vmem:[%s3760_s0 + $0x590] sm:$0xff]  ;;  %v194_v40 = vld [vmem:[%s3760_s0 + $0x548] sm:$0xff] }
  0x24   :  { %315 = vmatprep.subr.mxu0 %v266_v4  ;;  %404 = vmatprep.subr.mxu1 %v268_v5  ;;  %v196_v41 = vld [vmem:[%s3760_s0 + $0x558] sm:$0xff]  ;;  %v193_v42 = vld [vmem:[%s3760_s0 + $0x540] sm:$0xff]  ;;  %v195_v43 = vld [vmem:[%s3760_s0 + $0x550] sm:$0xff] }
  0x25   :  { %316 = vmatpush2.msra.mxu0 %v265_v6  ;;  %405 = vmatpush2.msra.mxu1 %v267_v7  ;;  %v186_v44 = vld [vmem:[%s3760_s0 + $0x508] sm:$0xff]  ;;  %v188_v45 = vld [vmem:[%s3760_s0 + $0x518] sm:$0xff]  ;;  %v185_v46 = vld [vmem:[%s3760_s0 + $0x500] sm:$0xff] }
  0x26   :  { %317 = vmatprep.subr.mxu0 %v258_v8  ;;  %406 = vmatprep.subr.mxu1 %v260_v9  ;;  %v187_v47 = vld [vmem:[%s3760_s0 + $0x510] sm:$0xff]  ;;  %v178_v48 = vld [vmem:[%s3760_s0 + $0x4c8] sm:$0xff]  ;;  %v180_v49 = vld [vmem:[%s3760_s0 + $0x4d8] sm:$0xff] }
  0x27   :  { %318 = vmatpush2.msra.mxu0 %v257_v10  ;;  %407 = vmatpush2.msra.mxu1 %v259_v11  ;;  %v177_v50 = vld [vmem:[%s3760_s0 + $0x4c0] sm:$0xff]  ;;  %v179_v51 = vld [vmem:[%s3760_s0 + $0x4d0] sm:$0xff]  ;;  %v170_v52 = vld [vmem:[%s3760_s0 + $0x488] sm:$0xff] }
  0x28   :  { %319 = vmatprep.subr.mxu0 %v250_v12  ;;  %408 = vmatprep.subr.mxu1 %v252_v13  ;;  %v172_v53 = vld [vmem:[%s3760_s0 + $0x498] sm:$0xff]  ;;  %v169_v54 = vld [vmem:[%s3760_s0 + $0x480] sm:$0xff]  ;;  %v171_v55 = vld [vmem:[%s3760_s0 + $0x490] sm:$0xff] }
  0x29   :  { %320 = vmatpush2.msra.mxu0 %v249_v14  ;;  %409 = vmatpush2.msra.mxu1 %v251_v15  ;;  %v162_v56 = vld [vmem:[%s3760_s0 + $0x448] sm:$0xff]  ;;  %v164_v57 = vld [vmem:[%s3760_s0 + $0x458] sm:$0xff]  ;;  %v161_v58 = vld [vmem:[%s3760_s0 + $0x440] sm:$0xff] }
  0x2a   :  { %321 = vmatprep.subr.mxu0 %v242_v16  ;;  %410 = vmatprep.subr.mxu1 %v244_v17  ;;  %v163_v59 = vld [vmem:[%s3760_s0 + $0x450] sm:$0xff]  ;;  %v154_v60 = vld [vmem:[%s3760_s0 + $0x408] sm:$0xff]  ;;  %v156_v61 = vld [vmem:[%s3760_s0 + $0x418] sm:$0xff] }
  0x2b   :  { %322 = vmatpush2.msra.mxu0 %v241_v18  ;;  %411 = vmatpush2.msra.mxu1 %v243_v19  ;;  %v153_v62 = vld [vmem:[%s3760_s0 + $0x400] sm:$0xff]  ;;  %v2666_v63 = vld [vmem:[%s3761_s1 + $0x8] sm:$0xff]  ;;  %v155_v0 = vld [vmem:[%s3760_s0 + $0x410] sm:$0xff] }
  0x2c   :  { %323 = vmatprep.subr.mxu0 %v234_v20  ;;  %412 = vmatprep.subr.mxu1 %v236_v21  ;;  %v2674_v1 = vld [vmem:[%s3761_s1] sm:$0xff]  ;;  %v150_v2 = vld [vmem:[%s3760_s0 + $0x3e8] sm:$0xff]  ;;  %v152_v3 = vld [vmem:[%s3760_s0 + $0x3f8] sm:$0xff] }
  0x2d   :  { %324 = vmatpush2.msra.mxu0 %v233_v22  ;;  %413 = vmatpush2.msra.mxu1 %v235_v23  ;;  %v149_v4 = vld [vmem:[%s3760_s0 + $0x3e0] sm:$0xff]  ;;  %v151_v5 = vld [vmem:[%s3760_s0 + $0x3f0] sm:$0xff]  ;;  %v142_v6 = vld [vmem:[%s3760_s0 + $0x3a8] sm:$0xff] }
  0x2e   :  { %325 = vmatprep.subr.mxu0 %v226_v24  ;;  %414 = vmatprep.subr.mxu1 %v228_v25  ;;  %v144_v7 = vld [vmem:[%s3760_s0 + $0x3b8] sm:$0xff]  ;;  %v141_v9 = vld [vmem:[%s3760_s0 + $0x3a0] sm:$0xff]  ;;  %v143_v10 = vld [vmem:[%s3760_s0 + $0x3b0] sm:$0xff] }
  0x2f   :  { %326 = vmatpush2.msra.mxu0 %v225_v26  ;;  %415 = vmatpush2.msra.mxu1 %v227_v27  ;;  %v2701_v8 = vld [vmem:[%s3761_s1 + $0x18] sm:$0xff]  ;;  %v2712_v11 = vld [vmem:[%s3761_s1 + $0x10] sm:$0xff]  ;;  %v134_v12 = vld [vmem:[%s3760_s0 + $0x368] sm:$0xff] }
  0x30   :  { %327 = vmatprep.subr.mxu0 %v218_v28  ;;  %416 = vmatprep.subr.mxu1 %v220_v29  ;;  %v136_v13 = vld [vmem:[%s3760_s0 + $0x378] sm:$0xff]  ;;  %v133_v14 = vld [vmem:[%s3760_s0 + $0x360] sm:$0xff]  ;;  %v135_v15 = vld [vmem:[%s3760_s0 + $0x370] sm:$0xff] }
  0x31   :  { %328 = vmatpush2.msra.mxu0 %v217_v30  ;;  %417 = vmatpush2.msra.mxu1 %v219_v31  ;;  %v126_v16 = vld [vmem:[%s3760_s0 + $0x328] sm:$0xff]  ;;  %v128_v17 = vld [vmem:[%s3760_s0 + $0x338] sm:$0xff]  ;;  %v125_v19 = vld [vmem:[%s3760_s0 + $0x320] sm:$0xff] }
  0x32   :  { %329 = vmatprep.subr.mxu0 %v210_v32  ;;  %418 = vmatprep.subr.mxu1 %v212_v33  ;;  %v2739_v18 = vld [vmem:[%s3761_s1 + $0x28] sm:$0xff]  ;;  %v127_v20 = vld [vmem:[%s3760_s0 + $0x330] sm:$0xff]  ;;  %v2750_v21 = vld [vmem:[%s3761_s1 + $0x20] sm:$0xff] }
  0x33   :  { %330 = vmatpush2.msra.mxu0 %v209_v34  ;;  %419 = vmatpush2.msra.mxu1 %v211_v35  ;;  %v118_v22 = vld [vmem:[%s3760_s0 + $0x2e8] sm:$0xff]  ;;  %v120_v23 = vld [vmem:[%s3760_s0 + $0x2f8] sm:$0xff]  ;;  %v117_v24 = vld [vmem:[%s3760_s0 + $0x2e0] sm:$0xff] }
  0x34   :  { %331 = vmatprep.subr.mxu0 %v202_v36  ;;  %420 = vmatprep.subr.mxu1 %v204_v37  ;;  %v119_v25 = vld [vmem:[%s3760_s0 + $0x2f0] sm:$0xff]  ;;  %v110_v26 = vld [vmem:[%s3760_s0 + $0x2a8] sm:$0xff]  ;;  %v112_v27 = vld [vmem:[%s3760_s0 + $0x2b8] sm:$0xff] }
  0x35   :  { %332 = vmatpush2.msra.mxu0 %v201_v38  ;;  %421 = vmatpush2.msra.mxu1 %v203_v39  ;;  %v2777_v28 = vld [vmem:[%s3761_s1 + $0x38] sm:$0xff]  ;;  %v109_v29 = vld [vmem:[%s3760_s0 + $0x2a0] sm:$0xff]  ;;  %v111_v30 = vld [vmem:[%s3760_s0 + $0x2b0] sm:$0xff] }
  0x36   :  { %333 = vmatprep.subr.mxu0 %v194_v40  ;;  %422 = vmatprep.subr.mxu1 %v196_v41  ;;  %v2788_v31 = vld [vmem:[%s3761_s1 + $0x30] sm:$0xff]  ;;  %v102_v32 = vld [vmem:[%s3760_s0 + $0x268] sm:$0xff]  ;;  %v104_v33 = vld [vmem:[%s3760_s0 + $0x278] sm:$0xff] }
  0x37   :  { %334 = vmatpush2.msra.mxu0 %v193_v42  ;;  %423 = vmatpush2.msra.mxu1 %v195_v43  ;;  %v101_v34 = vld [vmem:[%s3760_s0 + $0x260] sm:$0xff]  ;;  %v103_v35 = vld [vmem:[%s3760_s0 + $0x270] sm:$0xff]  ;;  %v94_v36 = vld [vmem:[%s3760_s0 + $0x228] sm:$0xff] }
  0x38   :  { %335 = vmatprep.subr.mxu0 %v186_v44  ;;  %424 = vmatprep.subr.mxu1 %v188_v45  ;;  %v96_v37 = vld [vmem:[%s3760_s0 + $0x238] sm:$0xff]  ;;  %v93_v38 = vld [vmem:[%s3760_s0 + $0x220] sm:$0xff]  ;;  %v95_v39 = vld [vmem:[%s3760_s0 + $0x230] sm:$0xff] }
  0x39   :  { %336 = vmatpush2.msra.mxu0 %v185_v46  ;;  %425 = vmatpush2.msra.mxu1 %v187_v47  ;;  %v86_v40 = vld [vmem:[%s3760_s0 + $0x1e8] sm:$0xff]  ;;  %v88_v41 = vld [vmem:[%s3760_s0 + $0x1f8] sm:$0xff]  ;;  %v85_v42 = vld [vmem:[%s3760_s0 + $0x1e0] sm:$0xff] }
  0x3a   :  { %337 = vmatprep.subr.mxu0 %v178_v48  ;;  %426 = vmatprep.subr.mxu1 %v180_v49  ;;  %v87_v43 = vld [vmem:[%s3760_s0 + $0x1f0] sm:$0xff]  ;;  %v78_v44 = vld [vmem:[%s3760_s0 + $0x1a8] sm:$0xff]  ;;  %v80_v45 = vld [vmem:[%s3760_s0 + $0x1b8] sm:$0xff] }
  0x3b   :  { %338 = vmatpush2.msra.mxu0 %v177_v50  ;;  %427 = vmatpush2.msra.mxu1 %v179_v51  ;;  %v77_v46 = vld [vmem:[%s3760_s0 + $0x1a0] sm:$0xff]  ;;  %v79_v47 = vld [vmem:[%s3760_s0 + $0x1b0] sm:$0xff]  ;;  %v70_v48 = vld [vmem:[%s3760_s0 + $0x168] sm:$0xff] }
  0x3c   :  { %339 = vmatprep.subr.mxu0 %v170_v52  ;;  %428 = vmatprep.subr.mxu1 %v172_v53  ;;  %v72_v49 = vld [vmem:[%s3760_s0 + $0x178] sm:$0xff]  ;;  %v69_v50 = vld [vmem:[%s3760_s0 + $0x160] sm:$0xff]  ;;  %v71_v51 = vld [vmem:[%s3760_s0 + $0x170] sm:$0xff] }
  0x3d   :  { %340 = vmatpush2.msra.mxu0 %v169_v54  ;;  %429 = vmatpush2.msra.mxu1 %v171_v55  ;;  %v62_v52 = vld [vmem:[%s3760_s0 + $0x128] sm:$0xff]  ;;  %v64_v53 = vld [vmem:[%s3760_s0 + $0x138] sm:$0xff]  ;;  %v61_v54 = vld [vmem:[%s3760_s0 + $0x120] sm:$0xff] }
  0x3e   :  { %341 = vmatprep.subr.mxu0 %v162_v56  ;;  %430 = vmatprep.subr.mxu1 %v164_v57  ;;  %v63_v55 = vld [vmem:[%s3760_s0 + $0x130] sm:$0xff]  ;;  %v54_v56 = vld [vmem:[%s3760_s0 + $0xe8] sm:$0xff]  ;;  %v56_v57 = vld [vmem:[%s3760_s0 + $0xf8] sm:$0xff] }
  0x3f   :  { %342 = vmatpush2.msra.mxu0 %v161_v58  ;;  %431 = vmatpush2.msra.mxu1 %v163_v59  ;;  %v53_v58 = vld [vmem:[%s3760_s0 + $0xe0] sm:$0xff]  ;;  %v55_v59 = vld [vmem:[%s3760_s0 + $0xf0] sm:$0xff] }
  0x40   :  { %343 = vmatprep.subr.mxu0 %v154_v60  ;;  %432 = vmatprep.subr.mxu1 %v156_v61  ;;  %v46_v60 = vld [vmem:[%s3760_s0 + $0xa8] sm:$0xff]  ;;  %v48_v61 = vld [vmem:[%s3760_s0 + $0xb8] sm:$0xff] }
  0x41   :  { %344 = vmatpush2.msra.mxu0 %v153_v62  ;;  %345 = vmatprep.mubr.f32.mxu0 %v2666_v63  ;;  %v45_v62 = vld [vmem:[%s3760_s0 + $0xa0] sm:$0xff] }
  0x42   :  { %433 = vmatpush2.msra.mxu1 %v155_v0  ;;  %434 = vmatprep.mubr.f32.mxu1 %v2666_v63  ;;  %v47_v0 = vld [vmem:[%s3760_s0 + $0xb0] sm:$0xff] }
  0x43   :  { %346 = vmatmul.mubr.f32.vlgmr.msra.gmra.mxu0 %v2674_v1  ;;  %435 = vmatmul.mubr.f32.vlgmr.msra.gmra.mxu1 %v2674_v1 }
  0x44   :  { %459 = vmatprep.subr.mxu0 %v150_v2  ;;  %548 = vmatprep.subr.mxu1 %v152_v3  ;;  %v38_v2 = vld [vmem:[%s3760_s0 + $0x68] sm:$0xff]  ;;  %v40_v3 = vld [vmem:[%s3760_s0 + $0x78] sm:$0xff] }
  0x45   :  { %460 = vmatpush1.msra.mxu0 %v149_v4  ;;  %549 = vmatpush1.msra.mxu1 %v151_v5  ;;  %v37_v4 = vld [vmem:[%s3760_s0 + $0x60] sm:$0xff]  ;;  %v39_v5 = vld [vmem:[%s3760_s0 + $0x70] sm:$0xff] }
  0x46   :  { %461 = vmatprep.subr.mxu0 %v142_v6  ;;  %550 = vmatprep.subr.mxu1 %v144_v7  ;;  %v30_v6 = vld [vmem:[%s3760_s0 + $0x28] sm:$0xff]  ;;  %v32_v7 = vld [vmem:[%s3760_s0 + $0x38] sm:$0xff] }
  0x47   :  { %351 = vmatprep.mubr.f32.mxu0 %v2701_v8  ;;  %440 = vmatprep.mubr.f32.mxu1 %v2701_v8 }
  0x48   :  { %462 = vmatpush1.msra.mxu0 %v141_v9  ;;  %551 = vmatpush1.msra.mxu1 %v143_v10  ;;  %v29_v9 = vld [vmem:[%s3760_s0 + $0x20] sm:$0xff]  ;;  %v31_v10 = vld [vmem:[%s3760_s0 + $0x30] sm:$0xff] }
  0x49   :  { %352 = vmatmul.mubr.f32.gmra.mxu0 %v2712_v11  ;;  %441 = vmatmul.mubr.f32.gmra.mxu1 %v2712_v11 }
  0x4a   :  { %463 = vmatprep.subr.mxu0 %v134_v12  ;;  %552 = vmatprep.subr.mxu1 %v136_v13  ;;  %v278_v12 = vld [vmem:[%s3760_s0 + $0x7e8] sm:$0xff]  ;;  %v280_v13 = vld [vmem:[%s3760_s0 + $0x7f8] sm:$0xff] }
  0x4b   :  { %464 = vmatpush1.msra.mxu0 %v133_v14  ;;  %553 = vmatpush1.msra.mxu1 %v135_v15  ;;  %v277_v14 = vld [vmem:[%s3760_s0 + $0x7e0] sm:$0xff]  ;;  %v279_v15 = vld [vmem:[%s3760_s0 + $0x7f0] sm:$0xff] }
  0x4c   :  { %465 = vmatprep.subr.mxu0 %v126_v16  ;;  %554 = vmatprep.subr.mxu1 %v128_v17  ;;  %v270_v16 = vld [vmem:[%s3760_s0 + $0x7a8] sm:$0xff]  ;;  %v272_v17 = vld [vmem:[%s3760_s0 + $0x7b8] sm:$0xff] }
  0x4d   :  { %357 = vmatprep.mubr.f32.mxu0 %v2739_v18  ;;  %446 = vmatprep.mubr.f32.mxu1 %v2739_v18 }
  0x4e   :  { %466 = vmatpush1.msra.mxu0 %v125_v19  ;;  %555 = vmatpush1.msra.mxu1 %v127_v20  ;;  %v269_v19 = vld [vmem:[%s3760_s0 + $0x7a0] sm:$0xff]  ;;  %v271_v20 = vld [vmem:[%s3760_s0 + $0x7b0] sm:$0xff] }
  0x4f   :  { %358 = vmatmul.mubr.f32.gmra.mxu0 %v2750_v21  ;;  %447 = vmatmul.mubr.f32.gmra.mxu1 %v2750_v21 }
  0x50   :  { %467 = vmatprep.subr.mxu0 %v118_v22  ;;  %556 = vmatprep.subr.mxu1 %v120_v23  ;;  %v262_v22 = vld [vmem:[%s3760_s0 + $0x768] sm:$0xff]  ;;  %v264_v23 = vld [vmem:[%s3760_s0 + $0x778] sm:$0xff] }
  0x51   :  { %468 = vmatpush1.msra.mxu0 %v117_v24  ;;  %557 = vmatpush1.msra.mxu1 %v119_v25  ;;  %v261_v24 = vld [vmem:[%s3760_s0 + $0x760] sm:$0xff]  ;;  %v263_v25 = vld [vmem:[%s3760_s0 + $0x770] sm:$0xff] }
  0x52   :  { %469 = vmatprep.subr.mxu0 %v110_v26  ;;  %558 = vmatprep.subr.mxu1 %v112_v27  ;;  %v254_v26 = vld [vmem:[%s3760_s0 + $0x728] sm:$0xff]  ;;  %v256_v27 = vld [vmem:[%s3760_s0 + $0x738] sm:$0xff] }
  0x53   :  { %363 = vmatprep.mubr.f32.mxu0 %v2777_v28  ;;  %452 = vmatprep.mubr.f32.mxu1 %v2777_v28 }
  0x54   :  { %470 = vmatpush1.msra.mxu0 %v109_v29  ;;  %559 = vmatpush1.msra.mxu1 %v111_v30  ;;  %v253_v29 = vld [vmem:[%s3760_s0 + $0x720] sm:$0xff]  ;;  %v255_v30 = vld [vmem:[%s3760_s0 + $0x730] sm:$0xff] }
  0x55   :  { %364 = vmatmul.mubr.f32.gmra.mxu0 %v2788_v31  ;;  %453 = vmatmul.mubr.f32.gmra.mxu1 %v2788_v31 }
  0x56   :  { %471 = vmatprep.subr.mxu0 %v102_v32  ;;  %560 = vmatprep.subr.mxu1 %v104_v33  ;;  %v246_v32 = vld [vmem:[%s3760_s0 + $0x6e8] sm:$0xff]  ;;  %v248_v33 = vld [vmem:[%s3760_s0 + $0x6f8] sm:$0xff] }
  0x57   :  { %472 = vmatpush1.msra.mxu0 %v101_v34  ;;  %561 = vmatpush1.msra.mxu1 %v103_v35  ;;  %v245_v34 = vld [vmem:[%s3760_s0 + $0x6e0] sm:$0xff]  ;;  %v247_v35 = vld [vmem:[%s3760_s0 + $0x6f0] sm:$0xff] }
  0x58   :  { %473 = vmatprep.subr.mxu0 %v94_v36  ;;  %562 = vmatprep.subr.mxu1 %v96_v37  ;;  %v238_v36 = vld [vmem:[%s3760_s0 + $0x6a8] sm:$0xff]  ;;  %v240_v37 = vld [vmem:[%s3760_s0 + $0x6b8] sm:$0xff] }
  0x59   :  { %474 = vmatpush1.msra.mxu0 %v93_v38  ;;  %563 = vmatpush1.msra.mxu1 %v95_v39  ;;  %v237_v38 = vld [vmem:[%s3760_s0 + $0x6a0] sm:$0xff]  ;;  %v239_v39 = vld [vmem:[%s3760_s0 + $0x6b0] sm:$0xff] }
  0x5a   :  { %475 = vmatprep.subr.mxu0 %v86_v40  ;;  %564 = vmatprep.subr.mxu1 %v88_v41  ;;  %v230_v40 = vld [vmem:[%s3760_s0 + $0x668] sm:$0xff]  ;;  %v232_v41 = vld [vmem:[%s3760_s0 + $0x678] sm:$0xff] }
  0x5b   :  { %476 = vmatpush1.msra.mxu0 %v85_v42  ;;  %565 = vmatpush1.msra.mxu1 %v87_v43  ;;  %v229_v42 = vld [vmem:[%s3760_s0 + $0x660] sm:$0xff]  ;;  %v231_v43 = vld [vmem:[%s3760_s0 + $0x670] sm:$0xff] }
  0x5c   :  { %477 = vmatprep.subr.mxu0 %v78_v44  ;;  %566 = vmatprep.subr.mxu1 %v80_v45  ;;  %v222_v44 = vld [vmem:[%s3760_s0 + $0x628] sm:$0xff]  ;;  %v224_v45 = vld [vmem:[%s3760_s0 + $0x638] sm:$0xff] }
  0x5d   :  { %478 = vmatpush1.msra.mxu0 %v77_v46  ;;  %567 = vmatpush1.msra.mxu1 %v79_v47  ;;  %v221_v46 = vld [vmem:[%s3760_s0 + $0x620] sm:$0xff]  ;;  %v223_v47 = vld [vmem:[%s3760_s0 + $0x630] sm:$0xff] }
  0x5e   :  { %479 = vmatprep.subr.mxu0 %v70_v48  ;;  %568 = vmatprep.subr.mxu1 %v72_v49  ;;  %v214_v48 = vld [vmem:[%s3760_s0 + $0x5e8] sm:$0xff]  ;;  %v216_v49 = vld [vmem:[%s3760_s0 + $0x5f8] sm:$0xff] }
  0x5f   :  { %480 = vmatpush1.msra.mxu0 %v69_v50  ;;  %569 = vmatpush1.msra.mxu1 %v71_v51  ;;  %v213_v50 = vld [vmem:[%s3760_s0 + $0x5e0] sm:$0xff]  ;;  %v215_v51 = vld [vmem:[%s3760_s0 + $0x5f0] sm:$0xff] }
  0x60   :  { %481 = vmatprep.subr.mxu0 %v62_v52  ;;  %570 = vmatprep.subr.mxu1 %v64_v53  ;;  %v206_v52 = vld [vmem:[%s3760_s0 + $0x5a8] sm:$0xff]  ;;  %v208_v53 = vld [vmem:[%s3760_s0 + $0x5b8] sm:$0xff] }
  0x61   :  { %482 = vmatpush1.msra.mxu0 %v61_v54  ;;  %571 = vmatpush1.msra.mxu1 %v63_v55  ;;  %v205_v54 = vld [vmem:[%s3760_s0 + $0x5a0] sm:$0xff]  ;;  %v207_v55 = vld [vmem:[%s3760_s0 + $0x5b0] sm:$0xff] }
  0x62   :  { %483 = vmatprep.subr.mxu0 %v54_v56  ;;  %572 = vmatprep.subr.mxu1 %v56_v57  ;;  %v198_v56 = vld [vmem:[%s3760_s0 + $0x568] sm:$0xff]  ;;  %v200_v57 = vld [vmem:[%s3760_s0 + $0x578] sm:$0xff] }
  0x63   :  { %484 = vmatpush1.msra.mxu0 %v53_v58  ;;  %573 = vmatpush1.msra.mxu1 %v55_v59  ;;  %v197_v58 = vld [vmem:[%s3760_s0 + $0x560] sm:$0xff]  ;;  %v199_v59 = vld [vmem:[%s3760_s0 + $0x570] sm:$0xff] }
  0x64   :  { %485 = vmatprep.subr.mxu0 %v46_v60  ;;  %574 = vmatprep.subr.mxu1 %v48_v61  ;;  %v190_v60 = vld [vmem:[%s3760_s0 + $0x528] sm:$0xff]  ;;  %v192_v61 = vld [vmem:[%s3760_s0 + $0x538] sm:$0xff] }
  0x65   :  { %486 = vmatpush1.msra.mxu0 %v45_v62  ;;  %575 = vmatpush1.msra.mxu1 %v47_v0  ;;  %v189_v62 = vld [vmem:[%s3760_s0 + $0x520] sm:$0xff]  ;;  %v191_v0 = vld [vmem:[%s3760_s0 + $0x530] sm:$0xff] }
  0x66   :  { %487 = vmatprep.subr.mxu0 %v38_v2  ;;  %576 = vmatprep.subr.mxu1 %v40_v3  ;;  %v182_v2 = vld [vmem:[%s3760_s0 + $0x4e8] sm:$0xff]  ;;  %v184_v3 = vld [vmem:[%s3760_s0 + $0x4f8] sm:$0xff] }
  0x67   :  { %488 = vmatpush1.msra.mxu0 %v37_v4  ;;  %577 = vmatpush1.msra.mxu1 %v39_v5  ;;  %v181_v4 = vld [vmem:[%s3760_s0 + $0x4e0] sm:$0xff]  ;;  %v183_v5 = vld [vmem:[%s3760_s0 + $0x4f0] sm:$0xff] }
  0x68   :  { %489 = vmatprep.subr.mxu0 %v30_v6  ;;  %578 = vmatprep.subr.mxu1 %v32_v7  ;;  %v174_v6 = vld [vmem:[%s3760_s0 + $0x4a8] sm:$0xff]  ;;  %v176_v7 = vld [vmem:[%s3760_s0 + $0x4b8] sm:$0xff] }
  0x69   :  { %490 = vmatpush1.msra.mxu0 %v29_v9  ;;  %579 = vmatpush1.msra.mxu1 %v31_v10  ;;  %v173_v9 = vld [vmem:[%s3760_s0 + $0x4a0] sm:$0xff]  ;;  %v175_v10 = vld [vmem:[%s3760_s0 + $0x4b0] sm:$0xff] }
  0x6a   :  { %491 = vmatprep.subr.mxu0 %v278_v12  ;;  %580 = vmatprep.subr.mxu1 %v280_v13  ;;  %v166_v12 = vld [vmem:[%s3760_s0 + $0x468] sm:$0xff]  ;;  %v168_v13 = vld [vmem:[%s3760_s0 + $0x478] sm:$0xff] }
  0x6b   :  { %492 = vmatpush2.msra.mxu0 %v277_v14  ;;  %581 = vmatpush2.msra.mxu1 %v279_v15  ;;  %v165_v14 = vld [vmem:[%s3760_s0 + $0x460] sm:$0xff]  ;;  %v167_v15 = vld [vmem:[%s3760_s0 + $0x470] sm:$0xff] }
  0x6c   :  { %493 = vmatprep.subr.mxu0 %v270_v16  ;;  %582 = vmatprep.subr.mxu1 %v272_v17  ;;  %v158_v16 = vld [vmem:[%s3760_s0 + $0x428] sm:$0xff]  ;;  %v160_v17 = vld [vmem:[%s3760_s0 + $0x438] sm:$0xff] }
  0x6d   :  { %494 = vmatpush2.msra.mxu0 %v269_v19  ;;  %583 = vmatpush2.msra.mxu1 %v271_v20  ;;  %v157_v19 = vld [vmem:[%s3760_s0 + $0x420] sm:$0xff]  ;;  %v159_v20 = vld [vmem:[%s3760_s0 + $0x430] sm:$0xff] }
  0x6e   :  { %495 = vmatprep.subr.mxu0 %v262_v22  ;;  %584 = vmatprep.subr.mxu1 %v264_v23  ;;  %v3765_v22 = vmov 1.0  }
  0x6f   :  { %496 = vmatpush2.msra.mxu0 %v261_v24  ;;  %585 = vmatpush2.msra.mxu1 %v263_v25 }
  0x70   :  { %497 = vmatprep.subr.mxu0 %v254_v26  ;;  %586 = vmatprep.subr.mxu1 %v256_v27 }
  0x71   :  { %498 = vmatpush2.msra.mxu0 %v253_v29  ;;  %587 = vmatpush2.msra.mxu1 %v255_v30 }
  0x72   :  { %499 = vmatprep.subr.mxu0 %v246_v32  ;;  %588 = vmatprep.subr.mxu1 %v248_v33 }
  0x73   :  { %500 = vmatpush2.msra.mxu0 %v245_v34  ;;  %589 = vmatpush2.msra.mxu1 %v247_v35 }
  0x74   :  { %501 = vmatprep.subr.mxu0 %v238_v36  ;;  %590 = vmatprep.subr.mxu1 %v240_v37 }
  0x75   :  { %502 = vmatpush2.msra.mxu0 %v237_v38  ;;  %591 = vmatpush2.msra.mxu1 %v239_v39 }
  0x76   :  { %503 = vmatprep.subr.mxu0 %v230_v40  ;;  %592 = vmatprep.subr.mxu1 %v232_v41 }
  0x77   :  { %504 = vmatpush2.msra.mxu0 %v229_v42  ;;  %593 = vmatpush2.msra.mxu1 %v231_v43 }
  0x78   :  { %505 = vmatprep.subr.mxu0 %v222_v44  ;;  %594 = vmatprep.subr.mxu1 %v224_v45 }
  0x79   :  { %506 = vmatpush2.msra.mxu0 %v221_v46  ;;  %595 = vmatpush2.msra.mxu1 %v223_v47 }
  0x7a   :  { %507 = vmatprep.subr.mxu0 %v214_v48  ;;  %596 = vmatprep.subr.mxu1 %v216_v49 }
  0x7b   :  { %508 = vmatpush2.msra.mxu0 %v213_v50  ;;  %597 = vmatpush2.msra.mxu1 %v215_v51 }
  0x7c   :  { %509 = vmatprep.subr.mxu0 %v206_v52  ;;  %598 = vmatprep.subr.mxu1 %v208_v53 }
  0x7d   :  { %510 = vmatpush2.msra.mxu0 %v205_v54  ;;  %599 = vmatpush2.msra.mxu1 %v207_v55 }
  0x7e   :  { %511 = vmatprep.subr.mxu0 %v198_v56  ;;  %600 = vmatprep.subr.mxu1 %v200_v57 }
  0x7f   :  { %512 = vmatpush2.msra.mxu0 %v197_v58  ;;  %601 = vmatpush2.msra.mxu1 %v199_v59 }
  0x80   :  { %513 = vmatprep.subr.mxu0 %v190_v60  ;;  %602 = vmatprep.subr.mxu1 %v192_v61 }
  0x81   :  { %514 = vmatpush2.msra.mxu0 %v189_v62  ;;  %603 = vmatpush2.msra.mxu1 %v191_v0 }
  0x82   :  { %515 = vmatprep.subr.mxu0 %v182_v2  ;;  %604 = vmatprep.subr.mxu1 %v184_v3 }
  0x83   :  { %516 = vmatpush2.msra.mxu0 %v181_v4  ;;  %605 = vmatpush2.msra.mxu1 %v183_v5 }
  0x84   :  { %517 = vmatprep.subr.mxu0 %v174_v6  ;;  %606 = vmatprep.subr.mxu1 %v176_v7 }
  0x85   :  { %518 = vmatpush2.msra.mxu0 %v173_v9  ;;  %607 = vmatpush2.msra.mxu1 %v175_v10 }
  0x86   :  { %519 = vmatprep.subr.mxu0 %v166_v12  ;;  %608 = vmatprep.subr.mxu1 %v168_v13 }
  0x87   :  { %520 = vmatpush2.msra.mxu0 %v165_v14  ;;  %609 = vmatpush2.msra.mxu1 %v167_v15 }
  0x88   :  { %521 = vmatprep.subr.mxu0 %v158_v16  ;;  %610 = vmatprep.subr.mxu1 %v160_v17 }
  0x89   :  { %522 = vmatpush2.msra.mxu0 %v157_v19  ;;  %523 = vmatprep.mubr.f32.mxu0 %v2666_v63 }
  0x8a   :  { %611 = vmatpush2.msra.mxu1 %v159_v20  ;;  %612 = vmatprep.mubr.f32.mxu1 %v2666_v63 }
  0x8b   :  { %524 = vmatmul.mubr.f32.vlgmr.msra.gmra.mxu0 %v2674_v1  ;;  %613 = vmatmul.mubr.f32.vlgmr.msra.gmra.mxu1 %v2674_v1 }
  0x8c   :  { %529 = vmatprep.mubr.f32.mxu0 %v2701_v8  ;;  %618 = vmatprep.mubr.f32.mxu1 %v2701_v8 }
  0x8d   :  { %1831 = vmatprep.subr.mxu0 %v3765_v22  ;;  %1887 = vmatprep.subr.mxu1 %v3765_v22 }
  0x8e   :  { %1832 = vmatpush3.msra.mxu0 %v3765_v22  ;;  %1888 = vmatpush3.msra.mxu1 %v3765_v22 }
  0x8f   :  { %530 = vmatmul.mubr.f32.gmra.mxu0 %v2712_v11  ;;  %619 = vmatmul.mubr.f32.gmra.mxu1 %v2712_v11 }
  0x90   :  { %535 = vmatprep.mubr.f32.mxu0 %v2739_v18  ;;  %624 = vmatprep.mubr.f32.mxu1 %v2739_v18 }
  0x91   :  { %1833 = vmatprep.subr.mxu0 %v3765_v22  ;;  %1889 = vmatprep.subr.mxu1 %v3765_v22 }
  0x92   :  { %1834 = vmatpush3.msra.mxu0 %v3765_v22  ;;  %1890 = vmatpush3.msra.mxu1 %v3765_v22 }
  0x93   :  { %536 = vmatmul.mubr.f32.gmra.mxu0 %v2750_v21  ;;  %625 = vmatmul.mubr.f32.gmra.mxu1 %v2750_v21 }
  0x94   :  { %541 = vmatprep.mubr.f32.mxu0 %v2777_v28  ;;  %630 = vmatprep.mubr.f32.mxu1 %v2777_v28 }
  0x95   :  { %1835 = vmatprep.subr.mxu0 %v3765_v22  ;;  %1891 = vmatprep.subr.mxu1 %v3765_v22 }
  0x96   :  { %1836 = vmatpush3.msra.mxu0 %v3765_v22  ;;  %1892 = vmatpush3.msra.mxu1 %v3765_v22 }
  0x97   :  { %542 = vmatmul.mubr.f32.gmra.mxu0 %v2788_v31  ;;  %631 = vmatmul.mubr.f32.gmra.mxu1 %v2788_v31 }
  0x98   :  { %1837 = vmatprep.subr.mxu0 %v3765_v22  ;;  %1893 = vmatprep.subr.mxu1 %v3765_v22 }
  0x99   :  { %1838 = vmatpush3.msra.mxu0 %v3765_v22  ;;  %1894 = vmatpush3.msra.mxu1 %v3765_v22 }
  0x9a   :  { %1839 = vmatprep.subr.mxu0 %v3765_v22  ;;  %1895 = vmatprep.subr.mxu1 %v3765_v22 }
  0x9b   :  { %1840 = vmatpush3.msra.mxu0 %v3765_v22  ;;  %1896 = vmatpush3.msra.mxu1 %v3765_v22 }
  0x9c   :  { %1841 = vmatprep.subr.mxu0 %v3765_v22  ;;  %1897 = vmatprep.subr.mxu1 %v3765_v22 }
  0x9d   :  { %1842 = vmatpush3.msra.mxu0 %v3765_v22  ;;  %1898 = vmatpush3.msra.mxu1 %v3765_v22 }
  0x9e   :  { %1843 = vmatprep.subr.mxu0 %v3765_v22  ;;  %1899 = vmatprep.subr.mxu1 %v3765_v22 }
  0x9f   :  { %1844 = vmatpush3.msra.mxu0 %v3765_v22  ;;  %1900 = vmatpush3.msra.mxu1 %v3765_v22 }
  0xa0   :  { %1845 = vmatprep.subr.mxu0 %v3765_v22  ;;  %1901 = vmatprep.subr.mxu1 %v3765_v22 }
  0xa1   :  { %1846 = vmatpush3.msra.mxu0 %v3765_v22  ;;  %1902 = vmatpush3.msra.mxu1 %v3765_v22 }
  0xa2   :  { %1847 = vmatprep.subr.mxu0 %v3765_v22  ;;  %1903 = vmatprep.subr.mxu1 %v3765_v22 }
  0xa3   :  { %1848 = vmatpush3.msra.mxu0 %v3765_v22  ;;  %1904 = vmatpush3.msra.mxu1 %v3765_v22 }
  0xa4   :  { %1849 = vmatprep.subr.mxu0 %v3765_v22  ;;  %1905 = vmatprep.subr.mxu1 %v3765_v22 }
  0xa5   :  { %1850 = vmatpush3.msra.mxu0 %v3765_v22  ;;  %1906 = vmatpush3.msra.mxu1 %v3765_v22 }
  0xa6   :  { %1851 = vmatprep.subr.mxu0 %v3765_v22  ;;  %1907 = vmatprep.subr.mxu1 %v3765_v22 }
  0xa7   :  { %1852 = vmatpush3.msra.mxu0 %v3765_v22  ;;  %1908 = vmatpush3.msra.mxu1 %v3765_v22 }
  0xa8   :  { %1853 = vmatprep.subr.mxu0 %v3765_v22  ;;  %1909 = vmatprep.subr.mxu1 %v3765_v22 }
  0xa9   :  { %1854 = vmatpush3.msra.mxu0 %v3765_v22  ;;  %1910 = vmatpush3.msra.mxu1 %v3765_v22 }
  0xaa   :  { %1855 = vmatprep.subr.mxu0 %v3765_v22  ;;  %1911 = vmatprep.subr.mxu1 %v3765_v22 }
  0xab   :  { %1856 = vmatpush3.msra.mxu0 %v3765_v22  ;;  %1912 = vmatpush3.msra.mxu1 %v3765_v22 }
  0xac   :  { %1857 = vmatprep.subr.mxu0 %v3765_v22  ;;  %1913 = vmatprep.subr.mxu1 %v3765_v22 }
  0xad   :  { %1858 = vmatpush3.msra.mxu0 %v3765_v22  ;;  %1914 = vmatpush3.msra.mxu1 %v3765_v22 }
  0xae   :  { %1859 = vmatprep.subr.mxu0 %v3765_v22  ;;  %1915 = vmatprep.subr.mxu1 %v3765_v22 }
  0xaf   :  { %1860 = vmatpush3.msra.mxu0 %v3765_v22  ;;  %1916 = vmatpush3.msra.mxu1 %v3765_v22 }
  0xb0   :  { %1861 = vmatprep.subr.mxu0 %v3765_v22  ;;  %1917 = vmatprep.subr.mxu1 %v3765_v22 }
  0xb1   :  { %1862 = vmatpush3.msra.mxu0 %v3765_v22  ;;  %1918 = vmatpush3.msra.mxu1 %v3765_v22 }
  0xb2   :  { %1943 = vmatprep.subr.mxu0 %v3765_v22  ;;  %1999 = vmatprep.subr.mxu1 %v3765_v22 }
 0x103   :  { %v3188_v63 = vpop.f32.mrf.mxu0  ;;  %v3190_v1 = vpop.f32.mrf.mxu1 }
 0x104   :  { %v637_v37 = vmul.f32 %v3188_v63, %v3188_v63  ;;  %v639_v38 = vmul.f32 %v3190_v1, %v3190_v1 }
 0x105   :  { %v3192_v8 = vpop.f32.mrf.mxu0  ;;  %v3194_v11 = vpop.f32.mrf.mxu1 }
 0x106   :  { %3797 = vst [vmem:[#allocation2_spill] sm:$0xff] %v3194_v11  ;;  %733 = vmatprep.mubr.f32.mxu0 %v3192_v8  ;;  %838 = vmatprep.mubr.f32.mxu1 %v3194_v11  ;;  %v638_v33 = vmul.f32 %v3192_v8, %v3192_v8  ;;  %v640_v34 = vmul.f32 %v3194_v11, %v3194_v11 }
 0x107   :  { %734 = vmatmul.mubr.f32.vlgmr.msra.gmra.mxu0 %v3188_v63  ;;  %839 = vmatmul.mubr.f32.vlgmr.msra.gmra.mxu1 %v3190_v1 }
 0x108   :  { %1944 = vmatpush3.msra.mxu0 %v3765_v22  ;;  %2000 = vmatpush3.msra.mxu1 %v3765_v22 }
 0x109   :  { %v3202_v18 = vpop.f32.mrf.mxu0  ;;  %v3204_v21 = vpop.f32.mrf.mxu1  ;;  %1945 = vmatprep.subr.mxu0 %v3765_v22  ;;  %2001 = vmatprep.subr.mxu1 %v3765_v22 }
 0x10a   :  { %3798 = vst [vmem:[#allocation3_spill] sm:$0xff] %v3202_v18  ;;  %3799 = vst [vmem:[#allocation4_spill] sm:$0xff] %v3204_v21  ;;  %1946 = vmatpush3.msra.mxu0 %v3765_v22  ;;  %2002 = vmatpush3.msra.mxu1 %v3765_v22  ;;  %v645_v39 = vmul.f32 %v3202_v18, %v3202_v18  ;;  %v647_v40 = vmul.f32 %v3204_v21, %v3204_v21 }
 0x10b   :  { %v3210_v28 = vpop.f32.mrf.mxu0  ;;  %v3212_v31 = vpop.f32.mrf.mxu1  ;;  %1947 = vmatprep.subr.mxu0 %v3765_v22  ;;  %2003 = vmatprep.subr.mxu1 %v3765_v22 }
 0x10c   :  { %3800 = vst [vmem:[#allocation5_spill] sm:$0xff] %v3210_v28  ;;  %3801 = vst [vmem:[#allocation6_spill] sm:$0xff] %v3212_v31  ;;  %738 = vmatprep.mubr.f32.mxu0 %v3210_v28  ;;  %843 = vmatprep.mubr.f32.mxu1 %v3212_v31  ;;  %v646_v35 = vmul.f32 %v3210_v28, %v3210_v28  ;;  %v648_v36 = vmul.f32 %v3212_v31, %v3212_v31 }
 0x10d   :  { %739 = vmatmul.mubr.f32.gmra.mxu0 %v3202_v18  ;;  %844 = vmatmul.mubr.f32.gmra.mxu1 %v3204_v21 }
 0x10e   :  { %1948 = vmatpush3.msra.mxu0 %v3765_v22  ;;  %2004 = vmatpush3.msra.mxu1 %v3765_v22 }
 0x10f   :  { %v3222_v23 = vpop.f32.mrf.mxu0  ;;  %v3224_v24 = vpop.f32.mrf.mxu1  ;;  %1949 = vmatprep.subr.mxu0 %v3765_v22  ;;  %2005 = vmatprep.subr.mxu1 %v3765_v22 }
 0x110   :  { %3802 = vst [vmem:[#allocation7_spill] sm:$0xff] %v3222_v23  ;;  %3803 = vst [vmem:[#allocation8_spill] sm:$0xff] %v3224_v24  ;;  %1950 = vmatpush3.msra.mxu0 %v3765_v22  ;;  %2006 = vmatpush3.msra.mxu1 %v3765_v22  ;;  %v653_v43 = vmul.f32 %v3222_v23, %v3222_v23  ;;  %v655_v44 = vmul.f32 %v3224_v24, %v3224_v24 }
 0x111   :  { %v3230_v25 = vpop.f32.mrf.mxu0  ;;  %v3232_v26 = vpop.f32.mrf.mxu1  ;;  %1951 = vmatprep.subr.mxu0 %v3765_v22  ;;  %2007 = vmatprep.subr.mxu1 %v3765_v22 }
 0x112   :  { %3804 = vst [vmem:[#allocation9_spill] sm:$0xff] %v3230_v25  ;;  %3805 = vst [vmem:[#allocation10_spill] sm:$0xff] %v3232_v26  ;;  %743 = vmatprep.mubr.f32.mxu0 %v3230_v25  ;;  %848 = vmatprep.mubr.f32.mxu1 %v3232_v26  ;;  %v654_v41 = vmul.f32 %v3230_v25, %v3230_v25  ;;  %v656_v42 = vmul.f32 %v3232_v26, %v3232_v26 }
 0x113   :  { %744 = vmatmul.mubr.f32.gmra.mxu0 %v3222_v23  ;;  %849 = vmatmul.mubr.f32.gmra.mxu1 %v3224_v24 }
 0x114   :  { %1952 = vmatpush3.msra.mxu0 %v3765_v22  ;;  %2008 = vmatpush3.msra.mxu1 %v3765_v22 }
 0x115   :  { %v3242_v27 = vpop.f32.mrf.mxu0  ;;  %v3244_v29 = vpop.f32.mrf.mxu1  ;;  %1953 = vmatprep.subr.mxu0 %v3765_v22  ;;  %2009 = vmatprep.subr.mxu1 %v3765_v22 }
 0x116   :  { %3806 = vst [vmem:[#allocation11_spill] sm:$0xff] %v3242_v27  ;;  %3807 = vst [vmem:[#allocation12_spill] sm:$0xff] %v3244_v29  ;;  %1954 = vmatpush3.msra.mxu0 %v3765_v22  ;;  %2010 = vmatpush3.msra.mxu1 %v3765_v22  ;;  %v661_v47 = vmul.f32 %v3242_v27, %v3242_v27  ;;  %v663_v48 = vmul.f32 %v3244_v29, %v3244_v29 }
 0x117   :  { %v3250_v30 = vpop.f32.mrf.mxu0  ;;  %v3252_v32 = vpop.f32.mrf.mxu1  ;;  %1955 = vmatprep.subr.mxu0 %v3765_v22  ;;  %2011 = vmatprep.subr.mxu1 %v3765_v22 }
 0x118   :  { %3808 = vst [vmem:[#allocation13_spill] sm:$0xff] %v3250_v30  ;;  %3809 = vst [vmem:[#allocation14_spill] sm:$0xff] %v3252_v32  ;;  %748 = vmatprep.mubr.f32.mxu0 %v3250_v30  ;;  %853 = vmatprep.mubr.f32.mxu1 %v3252_v32  ;;  %v662_v45 = vmul.f32 %v3250_v30, %v3250_v30  ;;  %v664_v46 = vmul.f32 %v3252_v32, %v3252_v32 }
 0x119   :  { %749 = vmatmul.mubr.f32.gmra.mxu0 %v3242_v27  ;;  %854 = vmatmul.mubr.f32.gmra.mxu1 %v3244_v29 }
 0x11a   :  { %753 = vmatprep.mubr.f32.mxu0 %v638_v33  ;;  %858 = vmatprep.mubr.f32.mxu1 %v640_v34  ;;  %v3767_v34 = vmov 0  }
 0x11b   :  { %1956 = vmatpush3.msra.mxu0 %v3765_v22  ;;  %2012 = vmatpush3.msra.mxu1 %v3765_v22 }
 0x11c   :  { %1957 = vmatprep.subr.mxu0 %v3765_v22  ;;  %2013 = vmatprep.subr.mxu1 %v3765_v22 }
 0x11d   :  { %754 = vmatmul.mubr.f32.gmra.mxu0 %v637_v37  ;;  %859 = vmatmul.mubr.f32.gmra.mxu1 %v639_v38 }
 0x11e   :  { %758 = vmatprep.mubr.f32.mxu0 %v646_v35  ;;  %863 = vmatprep.mubr.f32.mxu1 %v648_v36 }
 0x11f   :  { %1958 = vmatpush3.msra.mxu0 %v3765_v22  ;;  %2014 = vmatpush3.msra.mxu1 %v3765_v22 }
 0x120   :  { %1959 = vmatprep.subr.mxu0 %v3765_v22  ;;  %2015 = vmatprep.subr.mxu1 %v3765_v22 }
 0x121   :  { %759 = vmatmul.mubr.f32.gmra.mxu0 %v645_v39  ;;  %864 = vmatmul.mubr.f32.gmra.mxu1 %v647_v40 }
 0x122   :  { %763 = vmatprep.mubr.f32.mxu0 %v654_v41  ;;  %868 = vmatprep.mubr.f32.mxu1 %v656_v42 }
 0x123   :  { %1960 = vmatpush3.msra.mxu0 %v3765_v22  ;;  %2016 = vmatpush3.msra.mxu1 %v3765_v22 }
 0x124   :  { %1961 = vmatprep.subr.mxu0 %v3765_v22  ;;  %2017 = vmatprep.subr.mxu1 %v3765_v22 }
 0x125   :  { %764 = vmatmul.mubr.f32.gmra.mxu0 %v653_v43  ;;  %869 = vmatmul.mubr.f32.gmra.mxu1 %v655_v44 }
 0x126   :  { %768 = vmatprep.mubr.f32.mxu0 %v662_v45  ;;  %873 = vmatprep.mubr.f32.mxu1 %v664_v46 }
 0x127   :  { %1962 = vmatpush3.msra.mxu0 %v3765_v22  ;;  %2018 = vmatpush3.msra.mxu1 %v3765_v22 }
 0x128   :  { %1963 = vmatprep.subr.mxu0 %v3765_v22  ;;  %2019 = vmatprep.subr.mxu1 %v3765_v22 }
 0x129   :  { %769 = vmatmul.mubr.f32.gmra.mxu0 %v661_v47  ;;  %874 = vmatmul.mubr.f32.gmra.mxu1 %v663_v48 }
 0x12a   :  { %1964 = vmatpush3.msra.mxu0 %v3765_v22  ;;  %2020 = vmatpush3.msra.mxu1 %v3765_v22 }
 0x12b   :  { %1965 = vmatprep.subr.mxu0 %v3765_v22  ;;  %2021 = vmatprep.subr.mxu1 %v3765_v22 }
 0x12c   :  { %1966 = vmatpush3.msra.mxu0 %v3765_v22  ;;  %2022 = vmatpush3.msra.mxu1 %v3765_v22 }
 0x12d   :  { %1967 = vmatprep.subr.mxu0 %v3765_v22  ;;  %2023 = vmatprep.subr.mxu1 %v3765_v22 }
 0x12e   :  { %1968 = vmatpush3.msra.mxu0 %v3765_v22  ;;  %2024 = vmatpush3.msra.mxu1 %v3765_v22 }
 0x12f   :  { %1969 = vmatprep.subr.mxu0 %v3765_v22  ;;  %2025 = vmatprep.subr.mxu1 %v3765_v22 }
 0x130   :  { %1970 = vmatpush3.msra.mxu0 %v3765_v22  ;;  %2026 = vmatpush3.msra.mxu1 %v3765_v22 }
 0x131   :  { %1971 = vmatprep.subr.mxu0 %v3765_v22  ;;  %2027 = vmatprep.subr.mxu1 %v3765_v22 }
 0x132   :  { %1972 = vmatpush3.msra.mxu0 %v3765_v22  ;;  %2028 = vmatpush3.msra.mxu1 %v3765_v22 }
 0x133   :  { %1973 = vmatprep.subr.mxu0 %v3765_v22  ;;  %2029 = vmatprep.subr.mxu1 %v3765_v22 }
 0x134   :  { %1974 = vmatpush3.msra.mxu0 %v3765_v22  ;;  %2030 = vmatpush3.msra.mxu1 %v3765_v22 }
 0x135   :  { %2166 = vset.pattern.permute.xlu1 %v3767_v34  ;;  %2165 = vset.pattern.permute.xlu0 %v3767_v34 }
 0x14b   :  { %v3330_v49 = vpop.f32.mrf.mxu0  ;;  %v3332_v50 = vpop.f32.mrf.mxu1 }
 0x14c   :  { %3810 = vst [vmem:[#allocation15_spill] sm:$0xff] %v3332_v50  ;;  %v641_v5 = vmul.f32 %v3330_v49, %v3330_v49  ;;  %v643_v6 = vmul.f32 %v3332_v50, %v3332_v50 }
 0x14d   :  { %v3334_v51 = vpop.f32.mrf.mxu0  ;;  %v3336_v52 = vpop.f32.mrf.mxu1 }
 0x14e   :  { %3811 = vst [vmem:[#allocation16_spill] sm:$0xff] %v3334_v51  ;;  %3812 = vst [vmem:[#allocation17_spill] sm:$0xff] %v3336_v52  ;;  %943 = vmatprep.mubr.f32.mxu0 %v3334_v51  ;;  %1048 = vmatprep.mubr.f32.mxu1 %v3336_v52  ;;  %v642_v3 = vmul.f32 %v3334_v51, %v3334_v51  ;;  %v644_v4 = vmul.f32 %v3336_v52, %v3336_v52 }
 0x14f   :  { %v3340_v53 = vpop.f32.mrf.mxu0  ;;  %v3342_v54 = vpop.f32.mrf.mxu1  ;;  %944 = vmatmul.mubr.f32.vlgmr.msra.gmra.mxu0 %v3330_v49  ;;  %1049 = vmatmul.mubr.f32.vlgmr.msra.gmra.mxu1 %v3332_v50 }
 0x150   :  { %3813 = vst [vmem:[#allocation18_spill] sm:$0xff] %v3340_v53  ;;  %3814 = vst [vmem:[#allocation19_spill] sm:$0xff] %v3342_v54  ;;  %v649_v10 = vmul.f32 %v3340_v53, %v3340_v53  ;;  %v651_v12 = vmul.f32 %v3342_v54, %v3342_v54 }
 0x151   :  { %v3346_v55 = vpop.f32.mrf.mxu0  ;;  %v3348_v56 = vpop.f32.mrf.mxu1 }
 0x152   :  { %3815 = vst [vmem:[#allocation20_spill] sm:$0xff] %v3346_v55  ;;  %3816 = vst [vmem:[#allocation21_spill] sm:$0xff] %v3348_v56  ;;  %948 = vmatprep.mubr.f32.mxu0 %v3346_v55  ;;  %1053 = vmatprep.mubr.f32.mxu1 %v3348_v56  ;;  %v650_v7 = vmul.f32 %v3346_v55, %v3346_v55  ;;  %v652_v9 = vmul.f32 %v3348_v56, %v3348_v56 }
 0x153   :  { %v3352_v57 = vpop.f32.mrf.mxu0  ;;  %v3354_v58 = vpop.f32.mrf.mxu1  ;;  %949 = vmatmul.mubr.f32.gmra.mxu0 %v3340_v53  ;;  %1054 = vmatmul.mubr.f32.gmra.mxu1 %v3342_v54 }
 0x154   :  { %3817 = vst [vmem:[#allocation22_spill] sm:$0xff] %v3352_v57  ;;  %3818 = vst [vmem:[#allocation23_spill] sm:$0xff] %v3354_v58  ;;  %v657_v15 = vmul.f32 %v3352_v57, %v3352_v57  ;;  %v659_v16 = vmul.f32 %v3354_v58, %v3354_v58 }
 0x155   :  { %v3358_v59 = vpop.f32.mrf.mxu0  ;;  %v3360_v60 = vpop.f32.mrf.mxu1 }
 0x156   :  { %3819 = vst [vmem:[#allocation24_spill] sm:$0xff] %v3358_v59  ;;  %3820 = vst [vmem:[#allocation25_spill] sm:$0xff] %v3360_v60  ;;  %953 = vmatprep.mubr.f32.mxu0 %v3358_v59  ;;  %1058 = vmatprep.mubr.f32.mxu1 %v3360_v60  ;;  %v658_v13 = vmul.f32 %v3358_v59, %v3358_v59  ;;  %v660_v14 = vmul.f32 %v3360_v60, %v3360_v60 }
 0x157   :  { %v3364_v61 = vpop.f32.mrf.mxu0  ;;  %v3366_v62 = vpop.f32.mrf.mxu1  ;;  %954 = vmatmul.mubr.f32.gmra.mxu0 %v3352_v57  ;;  %1059 = vmatmul.mubr.f32.gmra.mxu1 %v3354_v58 }
 0x158   :  { %3821 = vst [vmem:[#allocation26_spill] sm:$0xff] %v3364_v61  ;;  %3822 = vst [vmem:[#allocation27_spill] sm:$0xff] %v3366_v62  ;;  %v665_v20 = vmul.f32 %v3364_v61, %v3364_v61  ;;  %v667_v33 = vmul.f32 %v3366_v62, %v3366_v62 }
 0x159   :  { %v3370_v0 = vpop.f32.mrf.mxu0  ;;  %v3372_v2 = vpop.f32.mrf.mxu1 }
 0x15a   :  { %3823 = vst [vmem:[#allocation28_spill] sm:$0xff] %v3370_v0  ;;  %3824 = vst [vmem:[#allocation29_spill] sm:$0xff] %v3372_v2  ;;  %958 = vmatprep.mubr.f32.mxu0 %v3370_v0  ;;  %1063 = vmatprep.mubr.f32.mxu1 %v3372_v2  ;;  %v666_v17 = vmul.f32 %v3370_v0, %v3370_v0  ;;  %v668_v19 = vmul.f32 %v3372_v2, %v3372_v2 }
 0x15b   :  { %959 = vmatmul.mubr.f32.gmra.mxu0 %v3364_v61  ;;  %1064 = vmatmul.mubr.f32.gmra.mxu1 %v3366_v62 }
 0x15c   :  { %963 = vmatprep.mubr.f32.mxu0 %v642_v3  ;;  %1068 = vmatprep.mubr.f32.mxu1 %v644_v4 }
 0x15f   :  { %964 = vmatmul.mubr.f32.gmra.mxu0 %v641_v5  ;;  %1069 = vmatmul.mubr.f32.gmra.mxu1 %v643_v6 }
 0x160   :  { %968 = vmatprep.mubr.f32.mxu0 %v650_v7  ;;  %1073 = vmatprep.mubr.f32.mxu1 %v652_v9 }
 0x163   :  { %969 = vmatmul.mubr.f32.gmra.mxu0 %v649_v10  ;;  %1074 = vmatmul.mubr.f32.gmra.mxu1 %v651_v12 }
 0x164   :  { %973 = vmatprep.mubr.f32.mxu0 %v658_v13  ;;  %1078 = vmatprep.mubr.f32.mxu1 %v660_v14 }
 0x167   :  { %974 = vmatmul.mubr.f32.gmra.mxu0 %v657_v15  ;;  %1079 = vmatmul.mubr.f32.gmra.mxu1 %v659_v16 }
 0x168   :  { %978 = vmatprep.mubr.f32.mxu0 %v666_v17  ;;  %1083 = vmatprep.mubr.f32.mxu1 %v668_v19 }
 0x16b   :  { %979 = vmatmul.mubr.f32.gmra.mxu0 %v665_v20  ;;  %1084 = vmatmul.mubr.f32.gmra.mxu1 %v667_v33 }
 0x1c7   :  { %v1863_v35 = vpop.f32.mrf.mxu0  ;;  %v1919_v36 = vpop.f32.mrf.mxu1 }
 0x1c9   :  { %v1864_v37 = vpop.f32.mrf.mxu0  ;;  %v1920_v38 = vpop.f32.mrf.mxu1 }
 0x1ca   :  { %v1865_v59 = vadd.f32 %v1864_v37, %v1863_v35  ;;  %v1921_v54 = vadd.f32 %v1920_v38, %v1919_v36 }
 0x1cc   :  { %v841_v25 = vadd.f32 %v1921_v54, %v1865_v59 }
 0x1cd   :  { %v1866_v39 = vpop.f32.mrf.mxu0  ;;  %v1922_v40 = vpop.f32.mrf.mxu1 }
 0x1cf   :  { %v1867_v41 = vpop.f32.mrf.mxu0  ;;  %v1923_v42 = vpop.f32.mrf.mxu1 }
 0x1d0   :  { %v1868_v53 = vadd.f32 %v1867_v41, %v1866_v39  ;;  %v1924_v21 = vadd.f32 %v1923_v42, %v1922_v40 }
 0x1d2   :  { %v846_v38 = vadd.f32 %v1924_v21, %v1868_v53 }
 0x1d3   :  { %v1869_v43 = vpop.f32.mrf.mxu0  ;;  %v1925_v44 = vpop.f32.mrf.mxu1 }
 0x1d5   :  { %v1870_v45 = vpop.f32.mrf.mxu0  ;;  %v1926_v46 = vpop.f32.mrf.mxu1 }
 0x1d6   :  { %v1871_v29 = vadd.f32 %v1870_v45, %v1869_v43  ;;  %v1927_v58 = vadd.f32 %v1926_v46, %v1925_v44 }
 0x1d8   :  { %v851_v11 = vadd.f32 %v1927_v58, %v1871_v29 }
 0x1d9   :  { %v1872_v47 = vpop.f32.mrf.mxu0  ;;  %v1928_v48 = vpop.f32.mrf.mxu1 }
 0x1db   :  { %v1873_v3 = vpop.f32.mrf.mxu0  ;;  %v1929_v4 = vpop.f32.mrf.mxu1 }
 0x1dc   :  { %v1874_v39 = vadd.f32 %v1873_v3, %v1872_v47  ;;  %v1930_v40 = vadd.f32 %v1929_v4, %v1928_v48 }
 0x1dd   :  { %v1875_v5 = vpop.f32.mrf.mxu0  ;;  %v1931_v6 = vpop.f32.mrf.mxu1 }
 0x1df   :  { %v1876_v7 = vpop.f32.mrf.mxu0  ;;  %v1932_v9 = vpop.f32.mrf.mxu1 }
 0x1e0   :  { %v1877_v57 = vadd.f32 %v1876_v7, %v1875_v5  ;;  %v1933_v24 = vadd.f32 %v1932_v9, %v1931_v6 }
 0x1e1   :  { %v1878_v10 = vpop.f32.mrf.mxu0  ;;  %v1934_v12 = vpop.f32.mrf.mxu1 }
 0x1e3   :  { %v1879_v13 = vpop.f32.mrf.mxu0  ;;  %v1935_v14 = vpop.f32.mrf.mxu1 }
 0x1e4   :  { %v1880_v42 = vadd.f32 %v1879_v13, %v1878_v10 }
 0x1e5   :  { %v1881_v15 = vpop.f32.mrf.mxu0  ;;  %v1937_v16 = vpop.f32.mrf.mxu1 }
 0x1e7   :  { %v1882_v17 = vpop.f32.mrf.mxu0  ;;  %v1938_v19 = vpop.f32.mrf.mxu1 }
 0x1e8   :  { %v1883_v29 = vadd.f32 %v1882_v17, %v1881_v15  ;;  %v1939_v58 = vadd.f32 %v1938_v19, %v1937_v16 }
 0x1e9   :  { %v3412_v20 = vpop.f32.mrf.mxu0  ;;  %v3414_v33 = vpop.f32.mrf.mxu1 }
 0x1ea   :  { %v871_v7 = vadd.f32 %v1939_v58, %v1883_v29 }
 0x1eb   :  { %v3416_v22 = vpop.f32.mrf.mxu0  ;;  %v3418_v34 = vpop.f32.mrf.mxu1 }
 0x20f   :  { %v1975_v50 = vpop.f32.mrf.mxu0  ;;  %v2031_v52 = vpop.f32.mrf.mxu1 }
 0x211   :  { %v1976_v51 = vpop.f32.mrf.mxu0  ;;  %v2032_v56 = vpop.f32.mrf.mxu1 }
 0x212   :  { %v1977_v31 = vadd.f32 %v1976_v51, %v1975_v50  ;;  %v2033_v35 = vadd.f32 %v2032_v56, %v2031_v52 }
 0x213   :  { %v1978_v55 = vpop.f32.mrf.mxu0  ;;  %v2034_v60 = vpop.f32.mrf.mxu1 }
 0x214   :  { %v946_v18 = vadd.f32 %v1977_v31, %v841_v25  ;;  %v861_v31 = vadd.f32 %v1933_v24, %v1877_v57 }
 0x215   :  { %v1979_v2 = vpop.f32.mrf.mxu0  ;;  %v2035_v0 = vpop.f32.mrf.mxu1 }
 0x216   :  { %v1980_v27 = vadd.f32 %v1979_v2, %v1978_v55  ;;  %v1051_v50 = vadd.f32 %v2033_v35, %v946_v18  ;;  %v1936_v55 = vadd.f32 %v1935_v14, %v1934_v12  ;;  %v2036_v2 = vadd.f32 %v2035_v0, %v2034_v60 }
 0x217   :  { %v1981_v28 = vpop.f32.mrf.mxu0  ;;  %v2037_v26 = vpop.f32.mrf.mxu1  ;;  %v1942_v12 = vadd.f32 %v3418_v34, %v3414_v33 }
 0x218   :  { %v951_v59 = vadd.f32 %v1980_v27, %v846_v38  ;;  %v3420_v44 = vmul.f32 0.0625, %v1051_v50  ;;  %v856_v27 = vadd.f32 %v1930_v40, %v1874_v39  ;;  %v866_v46 = vadd.f32 %v1936_v55, %v1880_v42 }
 0x219   :  { %v1982_v32 = vpop.f32.mrf.mxu0  ;;  %v2038_v30 = vpop.f32.mrf.mxu1 }
 0x21a   :  { %v1983_v51 = vadd.f32 %v1982_v32, %v1981_v28  ;;  %v1056_v28 = vadd.f32 %v2036_v2, %v951_v59  ;;  %v2039_v45 = vadd.f32 %v2038_v30, %v2037_v26  ;;  %v1886_v26 = vadd.f32 %v3416_v22, %v3412_v20 }
 0x21b   :  { %v1984_v62 = vpop.f32.mrf.mxu0  ;;  %v2040_v61 = vpop.f32.mrf.mxu1 }
 0x21c   :  { %v956_v52 = vadd.f32 %v1983_v51, %v851_v11  ;;  %v1090_v3 = vmul.f32 0.0625, %v1056_v28 }
 0x21d   :  { %v1985_v36 = vpop.f32.mrf.mxu0  ;;  %v2041_v37 = vpop.f32.mrf.mxu1 }
 0x21e   :  { %v1986_v56 = vadd.f32 %v1985_v36, %v1984_v62  ;;  %v1061_v60 = vadd.f32 %v2039_v45, %v956_v52  ;;  %v2042_v30 = vadd.f32 %v2041_v37, %v2040_v61  ;;  %v1098_v36 = vmul.f32 %v1090_v3, %v1090_v3  ;;  %v1108_v45 = vld [vmem:[%s3762_s3 + $0x18] sm:$0xff] }
 0x21f   :  { %v1987_v23 = vpop.f32.mrf.mxu0  ;;  %v2043_v54 = vpop.f32.mrf.mxu1  ;;  %v876_v61 = vadd.f32 %v1942_v12, %v1886_v26 }
 0x220   :  { %v961_v11 = vadd.f32 %v1986_v56, %v856_v27  ;;  %v1091_v16 = vmul.f32 0.0625, %v1061_v60 }
 0x221   :  { %v1988_v25 = vpop.f32.mrf.mxu0  ;;  %v2044_v41 = vpop.f32.mrf.mxu1 }
 0x222   :  { %v1989_v43 = vadd.f32 %v1988_v25, %v1987_v23  ;;  %v2045_v53 = vadd.f32 %v2044_v41, %v2043_v54  ;;  %v1097_v23 = vmul.f32 %v3420_v44, %v3420_v44  ;;  %v1066_v17 = vadd.f32 %v2042_v30, %v961_v11 }
 0x223   :  { %v1990_v21 = vpop.f32.mrf.mxu0  ;;  %v2046_v18 = vpop.f32.mrf.mxu1  ;;  %v1099_v40 = vmul.f32 %v1091_v16, %v1091_v16 }
 0x224   :  { %v966_v32 = vadd.f32 %v1989_v43, %v861_v31  ;;  %v1092_v34 = vmul.f32 0.0625, %v1066_v17 }
 0x225   :  { %v1991_v24 = vpop.f32.mrf.mxu0  ;;  %v2047_v57 = vpop.f32.mrf.mxu1 }
 0x226   :  { %v1071_v47 = vadd.f32 %v2045_v53, %v966_v32  ;;  %v1992_v48 = vadd.f32 %v1991_v24, %v1990_v21  ;;  %v2048_v6 = vadd.f32 %v2047_v57, %v2046_v18  ;;  %v1100_v2 = vmul.f32 %v1092_v34, %v1092_v34  ;;  %v1106_v18 = vld [vmem:[%s3762_s3 + $0x8] sm:$0xff]  ;;  %v1105_v53 = vld [vmem:[%s3762_s3] sm:$0xff] }
 0x227   :  { %v1993_v62 = vpop.f32.mrf.mxu0  ;;  %v2049_v0 = vpop.f32.mrf.mxu1 }
 0x228   :  { %v1093_v4 = vmul.f32 0.0625, %v1071_v47  ;;  %v971_v5 = vadd.f32 %v1992_v48, %v866_v46  ;;  %v1107_v47 = vld [vmem:[%s3762_s3 + $0x10] sm:$0xff] }
 0x229   :  { %v1994_v9 = vpop.f32.mrf.mxu0  ;;  %v2050_v10 = vpop.f32.mrf.mxu1 }
 0x22a   :  { %v1101_v13 = vsub.f32 %v1093_v4, %v1097_v23  ;;  %v1076_v14 = vadd.f32 %v2048_v6, %v971_v5  ;;  %v1995_v15 = vadd.f32 %v1994_v9, %v1993_v62  ;;  %v2051_v51 = vadd.f32 %v2050_v10, %v2049_v0 }
 0x22b   :  { %v1996_v19 = vpop.f32.mrf.mxu0  ;;  %v2052_v35 = vpop.f32.mrf.mxu1  ;;  %v2254_v62 = vmov 1   ;;  %v3825_v5 = vmov 0   ;;  %v2255_v9 = vmov 0.0  }
 0x22c   :  { %v1094_v38 = vmul.f32 0.0625, %v1076_v14  ;;  %v976_v50 = vadd.f32 %v1995_v15, %v871_v7  ;;  %v1109_v54 = vadd.f32 1e-05, %v1101_v13  ;;  %1413 = vmatprep.mubr.f32.mxu0 %v2255_v9  ;;  %1484 = vmatprep.mubr.f32.mxu1 %v2255_v9 }
 0x22d   :  { %v1997_v59 = vpop.f32.mrf.mxu0  ;;  %v2053_v22 = vpop.f32.mrf.mxu1 }
 0x22e   :  { %v1102_v20 = vsub.f32 %v1094_v38, %v1098_v36  ;;  %v1081_v37 = vadd.f32 %v2051_v51, %v976_v50  ;;  %v1998_v39 = vadd.f32 %v1997_v59, %v1996_v19  ;;  %v2054_v41 = vadd.f32 %v2053_v22, %v2052_v35  ;;  %v3826_v50 = vld [vmem:[#allocation2_spill] sm:$0xff] }
 0x22f   :  { %2173 = vrsqrt.f32 %v1109_v54 }
 0x230   :  { %v1110_v33 = vadd.f32 1e-05, %v1102_v20  ;;  %v1095_v31 = vmul.f32 0.0625, %v1081_v37  ;;  %v981_v25 = vadd.f32 %v1998_v39, %v876_v61  ;;  %v3829_v20 = vld [vmem:[#allocation22_spill] sm:$0xff]  ;;  %v3830_v39 = vld [vmem:[#allocation23_spill] sm:$0xff] }
 0x232   :  { %2175 = vrsqrt.f32 %v1110_v33  ;;  %v1103_v42 = vsub.f32 %v1095_v31, %v1099_v40  ;;  %v1086_v55 = vadd.f32 %v2054_v41, %v981_v25  ;;  %v3831_v25 = vld [vmem:[#allocation11_spill] sm:$0xff] }
 0x234   :  { %v1096_v43 = vmul.f32 0.0625, %v1086_v55  ;;  %v1111_v52 = vadd.f32 1e-05, %v1103_v42  ;;  %v3832_v42 = vld [vmem:[#allocation12_spill] sm:$0xff] }
 0x236   :  { %v1104_v56 = vsub.f32 %v1096_v43, %v1100_v2  ;;  %2177 = vrsqrt.f32 %v1111_v52  ;;  %v3833_v43 = vld [vmem:[#allocation26_spill] sm:$0xff] }
 0x238   :  { %v1112_v21 = vadd.f32 1e-05, %v1104_v56 }
 0x23a   :  { %2179 = vrsqrt.f32 %v1112_v21  ;;  %v3834_v21 = vld [vmem:[#allocation27_spill] sm:$0xff] }
 0x23c   :  { %v2174_v28 = vpop.eup %2173 }
 0x23d   :  { %v1117_v58 = vmul.f32 %v2174_v28, %v1105_v53 }
 0x23f   :  { %v2176_v32 = vpop.eup %2175  ;;  %v1121_v57 = vmul.f32 %v1117_v58, %v3420_v44 }
 0x240   :  { %v1118_v27 = vmul.f32 %v2176_v32, %v1106_v18 }
 0x242   :  { %v1122_v29 = vmul.f32 %v1118_v27, %v1090_v3 }
 0x243   :  { %v2178_v24 = vpop.eup %2177 }
 0x244   :  { %1131 = vrot.lane.b32.xlu1 %v1122_v29, %s2253_s18  ;;  %v1119_v23 = vmul.f32 %v2178_v24, %v1107_v47 }
 0x246   :  { %v1123_v11 = vmul.f32 %v1119_v23, %v1091_v16 }
 0x247   :  { %v2180_v46 = vpop.eup %2179 }
 0x248   :  { %1129 = vrot.lane.b32.xlu1 %v1121_v57, %s2253_s18  ;;  %v1120_v48 = vmul.f32 %v2180_v46, %v1108_v45  ;;  %v3837_v57 = vld [vmem:[#allocation18_spill] sm:$0xff] }
 0x24a   :  { %v1124_v60 = vmul.f32 %v1120_v48, %v1092_v34 }
 0x24c   :  { %1157 = vperm.xlu1 %2166, %v1119_v23   ;;  %1135 = vrot.lane.b32.xlu0 %v1124_v60, %s2253_s18 }
 0x250   :  { %1133 = vrot.lane.b32.xlu0 %v1123_v11, %s2253_s18  ;;  %2167 = vset.pattern.permute.xlu1 %v2254_v62 }
 0x254   :  { %1162 = vperm.xlu0 %2165, %v1120_v48   ;;  %v3838_v48 = vld [vmem:[#allocation13_spill] sm:$0xff] }
 0x258   :  { %1152 = vperm.xlu0 %2165, %v1118_v27   ;;  %v3835_v27 = vld [vmem:[#allocation3_spill] sm:$0xff] }
 0x25c   :  { %1147 = vperm.xlu0 %2165, %v1117_v58   ;;  %v3836_v58 = vld [vmem:[#allocation4_spill] sm:$0xff] }
 0x260   :  { %2168 = vset.pattern.permute.xlu0 %v2254_v62 }
 0x2b6   :  { %v1132_v44 = vpop.permute.xlu1 %1131 }
 0x2b7   :  { %v1142_v30 = vsub.f32 %v1106_v18, %v1132_v44  ;;  %v3839_v44 = vld [vmem:[#allocation14_spill] sm:$0xff] }
 0x2ba   :  { %v1130_v0 = vpop.permute.xlu1 %1129 }
 0x2bb   :  { %v1141_v3 = vsub.f32 %v1105_v53, %v1130_v0 }
 0x2bd   :  { %1199 = vperm.xlu0 %2168, %v1141_v3  }
 0x2be   :  { %v1136_v4 = vpop.permute.xlu0 %1135 }
 0x2bf   :  { %v1144_v26 = vsub.f32 %v1108_v45, %v1136_v4  ;;  %v3840_v4 = vld [vmem:[#allocation9_spill] sm:$0xff] }
 0x2c1   :  { %2170 = vset.pattern.permute.xlu0 %v3825_v5 }
 0x2c2   :  { %v1134_v6 = vpop.permute.xlu0 %1133 }
 0x2c3   :  { %v1143_v7 = vsub.f32 %v1107_v47, %v1134_v6 }
 0x2c5   :  { %1209 = vperm.xlu1 %2167, %v1143_v7  }
 0x2c7   :  { %v3466_v35 = vpop.permute.xlu1 %1157 }
 0x2c8   :  { %v1187_v40 = vmul.f32 %v3466_v35, %v3830_v39 }
 0x2c9   :  { %1214 = vperm.xlu1 %2167, %v1144_v26   ;;  %v3841_v26 = vld [vmem:[#allocation10_spill] sm:$0xff] }
 0x2cd   :  { %1204 = vperm.xlu1 %2167, %v1142_v30   ;;  %v1184_v30 = vmul.f32 %v3466_v35, %v3841_v26 }
 0x2cf   :  { %v3451_v10 = vpop.permute.xlu0 %1162 }
 0x2d0   :  { %v1189_v41 = vmul.f32 %v3451_v10, %v3831_v25  ;;  %v1191_v55 = vmul.f32 %v3451_v10, %v3832_v42  ;;  %v1193_v52 = vmul.f32 %v3451_v10, %v3833_v43  ;;  %v1195_v18 = vmul.f32 %v3451_v10, %v3834_v21  ;;  %v3847_v25 = vld [vmem:[#allocation24_spill] sm:$0xff] }
 0x2d1   :  { %2169 = vset.pattern.permute.xlu1 %v3825_v5  ;;  %v1190_v23 = vmul.f32 %v3451_v10, %v3838_v48  ;;  %v1192_v0 = vmul.f32 %v3451_v10, %v3839_v44  ;;  %v1182_v5 = vmul.f32 %v3466_v35, %v3840_v4  ;;  %v3849_v21 = vld [vmem:[#allocation20_spill] sm:$0xff]  ;;  %v1305_v44 = vld [vmem:[%s3763_s2 + $0xc0] sm:$0xff] }
 0x2d3   :  { %v3453_v12 = vpop.permute.xlu0 %1152 }
 0x2d4   :  { %v1173_v29 = vmul.f32 %v3453_v12, %v3835_v27  ;;  %v1175_v45 = vmul.f32 %v3453_v12, %v3836_v58  ;;  %v1177_v46 = vmul.f32 %v3453_v12, %v3837_v57  ;;  %v3851_v58 = vld [vmem:[#allocation16_spill] sm:$0xff]  ;;  %v3852_v57 = vld [vmem:[#allocation17_spill] sm:$0xff] }
 0x2d7   :  { %v3455_v13 = vpop.permute.xlu0 %1147 }
 0x2d8   :  { %v1165_v15 = vmul.f32 %v3455_v13, %v3188_v63  ;;  %v1167_v16 = vmul.f32 %v3455_v13, %v3190_v1  ;;  %v1169_v17 = vmul.f32 %v3455_v13, %v3330_v49  ;;  %v1166_v36 = vmul.f32 %v3455_v13, %v3192_v8  ;;  %v3827_v1 = vld [vmem:[#allocation7_spill] sm:$0xff]  ;;  %v3828_v49 = vld [vmem:[#allocation8_spill] sm:$0xff] }
 0x2d9   :  { %v1168_v51 = vmul.f32 %v3455_v13, %v3826_v50  ;;  %v1181_v59 = vmul.f32 %v3466_v35, %v3827_v1  ;;  %v1183_v22 = vmul.f32 %v3466_v35, %v3828_v49  ;;  %v1185_v8 = vmul.f32 %v3466_v35, %v3829_v20  ;;  %v3843_v50 = vld [vmem:[#allocation6_spill] sm:$0xff]  ;;  %v3844_v1 = vld [vmem:[#allocation28_spill] sm:$0xff] }
 0x338   :  { %v3457_v14 = vpop.permute.xlu0 %1199 }
 0x339   :  { %v1217_v19 = vadd.f32 %v3457_v14, %v1165_v15  ;;  %v1219_v38 = vadd.f32 %v3457_v14, %v1167_v16  ;;  %v1221_v63 = vadd.f32 %v3457_v14, %v1169_v17  ;;  %v1218_v54 = vadd.f32 %v3457_v14, %v1166_v36  ;;  %v3842_v17 = vld [vmem:[#allocation5_spill] sm:$0xff] }
 0x33a   :  { %v1220_v61 = vadd.f32 %v3457_v14, %v1168_v51  ;;  %v1176_v51 = vmul.f32 %v3453_v12, %v3843_v50  ;;  %v1297_v50 = vld [vmem:[%s3763_s2 + $0x80] sm:$0xff] }
 0x33b   :  { %2181 = vtanh.f32 %v1217_v19  ;;  %v1174_v19 = vmul.f32 %v3453_v12, %v3842_v17 }
 0x33c   :  { %2183 = vtanh.f32 %v1219_v38 }
 0x33d   :  { %2185 = vtanh.f32 %v1221_v63 }
 0x33e   :  { %2187 = vtanh.f32 %v1218_v54 }
 0x33f   :  { %2189 = vtanh.f32 %v1220_v61  ;;  %v3845_v61 = vld [vmem:[#allocation29_spill] sm:$0xff] }
 0x340   :  { %v3482_v37 = vpop.permute.xlu1 %1209  ;;  %v1196_v20 = vmul.f32 %v3451_v10, %v3845_v61  ;;  %v1291_v61 = vld [vmem:[%s3763_s2 + $0x50] sm:$0xff] }
 0x341   :  { %v1233_v34 = vadd.f32 %v3482_v37, %v1181_v59  ;;  %v1235_v33 = vadd.f32 %v3482_v37, %v1183_v22  ;;  %v1237_v31 = vadd.f32 %v3482_v37, %v1185_v8  ;;  %v1239_v2 = vadd.f32 %v3482_v37, %v1187_v40  ;;  %v3846_v40 = vld [vmem:[#allocation19_spill] sm:$0xff] }
 0x342   :  { %v1234_v36 = vadd.f32 %v3482_v37, %v1182_v5  ;;  %v1236_v63 = vadd.f32 %v3482_v37, %v1184_v30  ;;  %v1194_v59 = vmul.f32 %v3451_v10, %v3844_v1 }
 0x343   :  { %2191 = vtanh.f32 %v1233_v34  ;;  %v1179_v34 = vmul.f32 %v3453_v12, %v3846_v40  ;;  %v1292_v40 = vld [vmem:[%s3763_s2 + $0x58] sm:$0xff] }
 0x344   :  { %v1215_v56 = vpop.permute.xlu1 %1214  ;;  %2193 = vtanh.f32 %v1235_v33 }
 0x345   :  { %v1241_v28 = vadd.f32 %v1215_v56, %v1189_v41  ;;  %v1243_v32 = vadd.f32 %v1215_v56, %v1191_v55  ;;  %2195 = vtanh.f32 %v1237_v31  ;;  %v1245_v53 = vadd.f32 %v1215_v56, %v1193_v52 }
 0x346   :  { %2197 = vtanh.f32 %v1239_v2  ;;  %v1247_v24 = vadd.f32 %v1215_v56, %v1195_v18  ;;  %v1242_v6 = vadd.f32 %v1215_v56, %v1190_v23  ;;  %v1244_v15 = vadd.f32 %v1215_v56, %v1192_v0  ;;  %v3848_v2 = vld [vmem:[#allocation25_spill] sm:$0xff] }
 0x347   :  { %2199 = vtanh.f32 %v1241_v28  ;;  %v1246_v33 = vadd.f32 %v1215_v56, %v1194_v59  ;;  %v1186_v41 = vmul.f32 %v3466_v35, %v3847_v25  ;;  %v1248_v42 = vadd.f32 %v1215_v56, %v1196_v20  ;;  %v1299_v59 = vld [vmem:[%s3763_s2 + $0x90] sm:$0xff] }
 0x348   :  { %v1205_v47 = vpop.permute.xlu1 %1204  ;;  %2201 = vtanh.f32 %v1243_v32  ;;  %v3510_v7 = vpop.eup %2181  ;;  %v1188_v10 = vmul.f32 %v3466_v35, %v3848_v2  ;;  %v1178_v18 = vmul.f32 %v3453_v12, %v3849_v21  ;;  %v1170_v35 = vmul.f32 %v3455_v13, %v3851_v58 }
 0x349   :  { %v1225_v60 = vadd.f32 %v1205_v47, %v1173_v29  ;;  %v1227_v11 = vadd.f32 %v1205_v47, %v1175_v45  ;;  %2203 = vtanh.f32 %v1245_v53  ;;  %v1229_v3 = vadd.f32 %v1205_v47, %v1177_v46  ;;  %v3514_v16 = vpop.eup %2183  ;;  %v3850_v53 = vld [vmem:[#allocation21_spill] sm:$0xff] }
 0x34a   :  { %2205 = vtanh.f32 %v1247_v24  ;;  %v3519_v38 = vpop.eup %2185  ;;  %v1226_v49 = vadd.f32 %v1205_v47, %v1174_v19  ;;  %v1228_v8 = vadd.f32 %v1205_v47, %v1176_v51  ;;  %v1231_v43 = vadd.f32 %v1205_v47, %v1179_v34  ;;  %v1289_v51 = vld [vmem:[%s3763_s2 + $0x40] sm:$0xff] }
 0x34b   :  { %2207 = vtanh.f32 %v1225_v60  ;;  %v3524_v54 = vpop.eup %2187  ;;  %v1238_v28 = vadd.f32 %v3482_v37, %v1186_v41  ;;  %v1180_v27 = vmul.f32 %v3453_v12, %v3850_v53  ;;  %v1240_v56 = vadd.f32 %v3482_v37, %v1188_v10  ;;  %v3853_v60 = vld [vmem:[#allocation15_spill] sm:$0xff]  ;;  %v1283_v53 = vld [vmem:[%s3763_s2 + $0x10] sm:$0xff] }
 0x34c   :  { %2209 = vtanh.f32 %v1227_v11  ;;  %v3528_v22 = vpop.eup %2189  ;;  %v1230_v45 = vadd.f32 %v1205_v47, %v1178_v18  ;;  %v1172_v46 = vmul.f32 %v3455_v13, %v3852_v57  ;;  %v1171_v12 = vmul.f32 %v3455_v13, %v3853_v60  ;;  %v1307_v13 = vld [vmem:[%s3763_s2 + $0xd0] sm:$0xff]  ;;  %v1284_v18 = vld [vmem:[%s3763_s2 + $0x18] sm:$0xff] }
 0x34d   :  { %2211 = vtanh.f32 %v1229_v3  ;;  %v1232_v48 = vadd.f32 %v1205_v47, %v1180_v27  ;;  %v1222_v37 = vadd.f32 %v3457_v14, %v1170_v35  ;;  %v1306_v47 = vld [vmem:[%s3763_s2 + $0xc8] sm:$0xff]  ;;  %v1316_v35 = vmul.f32 %v3528_v22, %v1284_v18 }
 0x34e   :  { %2213 = vtanh.f32 %v1242_v6  ;;  %v1224_v0 = vadd.f32 %v3457_v14, %v1172_v46  ;;  %v1223_v4 = vadd.f32 %v3457_v14, %v1171_v12  ;;  %v1308_v6 = vld [vmem:[%s3763_s2 + $0xd8] sm:$0xff]  ;;  %v1298_v14 = vld [vmem:[%s3763_s2 + $0x88] sm:$0xff]  ;;  %v1315_v46 = vmul.f32 %v3514_v16, %v1283_v53  ;;  %v1301_v16 = vld [vmem:[%s3763_s2 + $0xa0] sm:$0xff] }
 0x34f   :  { %2215 = vtanh.f32 %v1244_v15  ;;  %v1302_v22 = vld [vmem:[%s3763_s2 + $0xa8] sm:$0xff] }
 0x350   :  { %v3532_v39 = vpop.eup %2191  ;;  %2217 = vtanh.f32 %v1234_v36  ;;  %v1300_v36 = vld [vmem:[%s3763_s2 + $0x98] sm:$0xff] }
 0x351   :  { %v3536_v31 = vpop.eup %2193  ;;  %2219 = vtanh.f32 %v1236_v63  ;;  %v1329_v25 = vmul.f32 %v3532_v39, %v1297_v50  ;;  %v1281_v39 = vld [vmem:[%s3763_s2] sm:$0xff] }
 0x352   :  { %v3540_v55 = vpop.eup %2195  ;;  %2221 = vtanh.f32 %v1226_v49  ;;  %v1290_v49 = vld [vmem:[%s3763_s2 + $0x48] sm:$0xff]  ;;  %v1331_v10 = vmul.f32 %v3536_v31, %v1299_v59 }
 0x353   :  { %v3544_v52 = vpop.eup %2197  ;;  %2223 = vtanh.f32 %v1228_v8 }
 0x354   :  { %v2200_v32 = vpop.eup %2199  ;;  %2225 = vtanh.f32 %v1246_v33 }
 0x355   :  { %v2202_v29 = vpop.eup %2201  ;;  %2227 = vtanh.f32 %v1248_v42  ;;  %v1337_v30 = vmul.f32 %v2200_v32, %v1305_v44  ;;  %v1282_v42 = vld [vmem:[%s3763_s2 + $0x8] sm:$0xff]  ;;  %v3854_v44 = vmov 1.0  }
 0x356   :  { %v3554_v24 = vpop.eup %2203  ;;  %2229 = vtanh.f32 %v1231_v43  ;;  %v1339_v19 = vmul.f32 %v2202_v29, %v1307_v13  ;;  %v1314_v31 = vmul.f32 %v3524_v54, %v1282_v42  ;;  %v1312_v29 = vld [vmem:[%s3763_s2 + $0xf8] sm:$0xff]  ;;  %v1309_v54 = vld [vmem:[%s3763_s2 + $0xe0] sm:$0xff] }
 0x357   :  { %v3558_v23 = vpop.eup %2205  ;;  %2231 = vtanh.f32 %v1238_v28 }
 0x358   :  { %v2208_v11 = vpop.eup %2207  ;;  %2233 = vtanh.f32 %v1240_v56  ;;  %v1310_v56 = vld [vmem:[%s3763_s2 + $0xe8] sm:$0xff] }
 0x359   :  { %v2210_v3 = vpop.eup %2209  ;;  %2235 = vtanh.f32 %v1230_v45  ;;  %v1321_v41 = vmul.f32 %v2208_v11, %v1289_v51  ;;  %v1313_v45 = vmul.f32 %v3510_v7, %v1281_v39  ;;  %v1288_v51 = vld [vmem:[%s3763_s2 + $0x38] sm:$0xff] }
 0x35a   :  { %v3574_v5 = vpop.eup %2211  ;;  %2237 = vtanh.f32 %v1232_v48  ;;  %v1323_v21 = vmul.f32 %v2210_v3, %v1291_v61  ;;  %v1311_v48 = vld [vmem:[%s3763_s2 + $0xf0] sm:$0xff] }
 0x35b   :  { %v2214_v26 = vpop.eup %2213  ;;  %2239 = vtanh.f32 %v1222_v37  ;;  %v1304_v37 = vld [vmem:[%s3763_s2 + $0xb8] sm:$0xff]  ;;  %v1303_v3 = vld [vmem:[%s3763_s2 + $0xb0] sm:$0xff]  ;;  %v1343_v13 = vmul.f32 %v3558_v23, %v1311_v48 }
 0x35c   :  { %v2216_v15 = vpop.eup %2215  ;;  %v1338_v17 = vmul.f32 %v2214_v26, %v1306_v47  ;;  %2241 = vtanh.f32 %v1224_v0  ;;  %v1341_v0 = vmul.f32 %v3554_v24, %v1309_v54  ;;  %v1296_v26 = vld [vmem:[%s3763_s2 + $0x78] sm:$0xff]  ;;  %v1293_v24 = vld [vmem:[%s3763_s2 + $0x60] sm:$0xff]  ;;  %v1295_v23 = vld [vmem:[%s3763_s2 + $0x70] sm:$0xff] }
 0x35d   :  { %v2218_v63 = vpop.eup %2217  ;;  %2243 = vtanh.f32 %v1223_v4  ;;  %v1340_v1 = vmul.f32 %v2216_v15, %v1308_v6  ;;  %v1294_v4 = vld [vmem:[%s3763_s2 + $0x68] sm:$0xff]  ;;  %v1333_v15 = vmul.f32 %v3540_v55, %v1301_v16  ;;  %v1285_v55 = vld [vmem:[%s3763_s2 + $0x20] sm:$0xff]  ;;  %v1325_v59 = vmul.f32 %v3574_v5, %v1293_v24 }
 0x35e   :  { %v2220_v20 = vpop.eup %2219  ;;  %1373 = vmatprep.subr.mxu0 %v1338_v17  ;;  %v1330_v8 = vmul.f32 %v2218_v63, %v1298_v14  ;;  %v1286_v17 = vld [vmem:[%s3763_s2 + $0x28] sm:$0xff] }
 0x35f   :  { %v2222_v34 = vpop.eup %2221  ;;  %1444 = vmatprep.subr.mxu1 %v1340_v1  ;;  %1374 = vmatpush1.msra.mxu0 %v1337_v30  ;;  %v1332_v33 = vmul.f32 %v2220_v20, %v1300_v36  ;;  %v1335_v36 = vmul.f32 %v3544_v52, %v1303_v3 }
 0x360   :  { %v2224_v2 = vpop.eup %2223  ;;  %1445 = vmatpush1.msra.mxu1 %v1339_v19  ;;  %1375 = vmatprep.subr.mxu0 %v1330_v8  ;;  %v1322_v43 = vmul.f32 %v2222_v34, %v1290_v49  ;;  %v1287_v49 = vld [vmem:[%s3763_s2 + $0x30] sm:$0xff]  ;;  %v1317_v8 = vmul.f32 %v3519_v38, %v1285_v55 }
 0x361   :  { %v2226_v28 = vpop.eup %2225  ;;  %1446 = vmatprep.subr.mxu1 %v1332_v33  ;;  %1376 = vmatpush1.msra.mxu0 %v1329_v25  ;;  %v1324_v32 = vmul.f32 %v2224_v2, %v1292_v40 }
 0x362   :  { %v2228_v27 = vpop.eup %2227  ;;  %1447 = vmatpush1.msra.mxu1 %v1331_v10  ;;  %1377 = vmatprep.subr.mxu0 %v1322_v43  ;;  %v1342_v7 = vmul.f32 %v2226_v28, %v1310_v56 }
 0x363   :  { %v2230_v58 = vpop.eup %2229  ;;  %1448 = vmatprep.subr.mxu1 %v1324_v32  ;;  %1378 = vmatpush1.msra.mxu0 %v1321_v41  ;;  %v1344_v12 = vmul.f32 %v2228_v27, %v1312_v29 }
 0x364   :  { %v2232_v57 = vpop.eup %2231  ;;  %1449 = vmatpush1.msra.mxu1 %v1323_v21  ;;  %1379 = vmatprep.subr.mxu0 %v1314_v31  ;;  %v1327_v52 = vmul.f32 %v2230_v58, %v1295_v23 }
 0x365   :  { %v2234_v60 = vpop.eup %2233  ;;  %1450 = vmatprep.subr.mxu1 %v1316_v35  ;;  %1380 = vmatpush1.msra.mxu0 %v1313_v45  ;;  %v1334_v6 = vmul.f32 %v2232_v57, %v1302_v22  ;;  %v1793_v22 = vld [vmem:[%s3762_s3 + $0x20] sm:$0x1] }
 0x366   :  { %v2236_v11 = vpop.eup %2235  ;;  %1451 = vmatpush1.msra.mxu1 %v1315_v46  ;;  %1826 = vmatmul.mubr.msk.f32.vlgmr.msra.gmra.mxu0 %vm1345_vm0, %v3854_v44  ;;  %v1336_v14 = vmul.f32 %v2234_v60, %v1304_v37 }
 0x367   :  { %v2238_v47 = vpop.eup %2237  ;;  %1515 = vmatprep.subr.mxu0 %v1342_v7  ;;  %1586 = vmatprep.subr.mxu1 %v1344_v12  ;;  %v1326_v50 = vmul.f32 %v2236_v11, %v1294_v4 }
 0x368   :  { %v2240_v30 = vpop.eup %2239  ;;  %1827 = vmatmul.mubr.msk.f32.vlgmr.msra.gmra.mxu1 %vm1345_vm0, %v3854_v44  ;;  %1516 = vmatpush1.msra.mxu0 %v1341_v0  ;;  %v1328_v1 = vmul.f32 %v2238_v47, %v1296_v26 }
 0x369   :  { %v2242_v19 = vpop.eup %2241  ;;  %1587 = vmatpush1.msra.mxu1 %v1343_v13  ;;  %1517 = vmatprep.subr.mxu0 %v1334_v6  ;;  %v1318_v61 = vmul.f32 %v2240_v30, %v1286_v17 }
 0x36a   :  { %v2244_v63 = vpop.eup %2243  ;;  %1588 = vmatprep.subr.mxu1 %v1336_v14  ;;  %1518 = vmatpush1.msra.mxu0 %v1333_v15  ;;  %v1320_v20 = vmul.f32 %v2242_v19, %v1288_v51 }
 0x36b   :  { %1589 = vmatpush1.msra.mxu1 %v1335_v36  ;;  %1519 = vmatprep.subr.mxu0 %v1326_v50  ;;  %v1319_v40 = vmul.f32 %v2244_v63, %v1287_v49 }
 0x36c   :  { %1590 = vmatprep.subr.mxu1 %v1328_v1  ;;  %1520 = vmatpush1.msra.mxu0 %v1325_v59 }
 0x36d   :  { %1591 = vmatpush1.msra.mxu1 %v1327_v52  ;;  %1521 = vmatprep.subr.mxu0 %v1318_v61 }
 0x36e   :  { %1592 = vmatprep.subr.mxu1 %v1320_v20  ;;  %1522 = vmatpush1.msra.mxu0 %v1317_v8 }
 0x36f   :  { %1555 = vmatprep.mubr.f32.mxu0 %v2255_v9  ;;  %1593 = vmatpush1.msra.mxu1 %v1319_v40 }
 0x370   :  { %1828 = vmatmul.mubr.msk.f32.vlgmr.msra.gmra.mxu0 %vm1345_vm0, %v3854_v44  ;;  %1626 = vmatprep.mubr.f32.mxu1 %v2255_v9 }
 0x371   :  { %1829 = vmatmul.mubr.msk.f32.vlgmr.msra.gmra.mxu1 %vm1345_vm0, %v3854_v44  ;;  %2089 = vmatprep.subr.mxu0 %v2255_v9 }
 0x372   :  { %2090 = vmatpush3.msra.mxu0 %v3854_v44  ;;  %2124 = vmatprep.subr.mxu1 %v2255_v9 }
 0x373   :  { %2091 = vmatprep.subr.mxu0 %v2255_v9  ;;  %2125 = vmatpush3.msra.mxu1 %v3854_v44 }
 0x374   :  { %2092 = vmatpush3.msra.mxu0 %v3854_v44  ;;  %2126 = vmatprep.subr.mxu1 %v2255_v9 }
 0x375   :  { %2093 = vmatprep.subr.mxu0 %v2255_v9  ;;  %2127 = vmatpush3.msra.mxu1 %v3854_v44 }
 0x376   :  { %2094 = vmatpush3.msra.mxu0 %v3854_v44  ;;  %2128 = vmatprep.subr.mxu1 %v2255_v9 }
 0x377   :  { %2095 = vmatprep.subr.mxu0 %v2255_v9  ;;  %2129 = vmatpush3.msra.mxu1 %v3854_v44 }
 0x378   :  { %2096 = vmatpush3.msra.mxu0 %v3854_v44  ;;  %2130 = vmatprep.subr.mxu1 %v2255_v9 }
 0x379   :  { %2097 = vmatprep.subr.mxu0 %v2255_v9  ;;  %2131 = vmatpush3.msra.mxu1 %v3854_v44 }
 0x37a   :  { %2098 = vmatpush3.msra.mxu0 %v3854_v44  ;;  %2132 = vmatprep.subr.mxu1 %v2255_v9 }
 0x37b   :  { %2099 = vmatprep.subr.mxu0 %v2255_v9  ;;  %2133 = vmatpush3.msra.mxu1 %v3854_v44 }
 0x37c   :  { %2100 = vmatpush3.msra.mxu0 %v3854_v44  ;;  %2134 = vmatprep.subr.mxu1 %v2255_v9 }
 0x37d   :  { %2101 = vmatprep.subr.mxu0 %v2255_v9  ;;  %2135 = vmatpush3.msra.mxu1 %v3854_v44 }
 0x37e   :  { %2102 = vmatpush3.msra.mxu0 %v3854_v44  ;;  %2136 = vmatprep.subr.mxu1 %v2255_v9 }
 0x37f   :  { %2103 = vmatprep.subr.mxu0 %v2255_v9  ;;  %2137 = vmatpush3.msra.mxu1 %v3854_v44 }
 0x380   :  { %2104 = vmatpush3.msra.mxu0 %v3854_v44  ;;  %2138 = vmatprep.subr.mxu1 %v2255_v9 }
 0x381   :  { %2105 = vmatprep.subr.mxu0 %v2255_v9  ;;  %2139 = vmatpush3.msra.mxu1 %v3854_v44 }
 0x382   :  { %2106 = vmatpush3.msra.mxu0 %v3854_v44  ;;  %2140 = vmatprep.subr.mxu1 %v2255_v9 }
 0x383   :  { %2107 = vmatprep.subr.mxu0 %v2255_v9  ;;  %2141 = vmatpush3.msra.mxu1 %v3854_v44 }
 0x384   :  { %2108 = vmatpush3.msra.mxu0 %v3854_v44  ;;  %2142 = vmatprep.subr.mxu1 %v2255_v9 }
 0x385   :  { %2109 = vmatprep.subr.mxu0 %v2255_v9  ;;  %2143 = vmatpush3.msra.mxu1 %v3854_v44 }
 0x386   :  { %2110 = vmatpush3.msra.mxu0 %v3854_v44  ;;  %2144 = vmatprep.subr.mxu1 %v2255_v9 }
 0x387   :  { %2111 = vmatprep.subr.mxu0 %v2255_v9  ;;  %2145 = vmatpush3.msra.mxu1 %v3854_v44 }
 0x388   :  { %2112 = vmatpush3.msra.mxu0 %v3854_v44  ;;  %2146 = vmatprep.subr.mxu1 %v2255_v9 }
 0x389   :  { %2113 = vmatprep.subr.mxu0 %v2255_v9  ;;  %2147 = vmatpush3.msra.mxu1 %v3854_v44 }
 0x38a   :  { %2114 = vmatpush3.msra.mxu0 %v3854_v44  ;;  %2148 = vmatprep.subr.mxu1 %v2255_v9 }
 0x38b   :  { %2115 = vmatprep.subr.mxu0 %v2255_v9  ;;  %2149 = vmatpush3.msra.mxu1 %v3854_v44 }
 0x38c   :  { %2116 = vmatpush3.msra.mxu0 %v3854_v44  ;;  %2150 = vmatprep.subr.mxu1 %v2255_v9 }
 0x38d   :  { %2117 = vmatprep.subr.mxu0 %v2255_v9  ;;  %2151 = vmatpush3.msra.mxu1 %v3854_v44 }
 0x38e   :  { %2118 = vmatpush3.msra.mxu0 %v3854_v44  ;;  %2152 = vmatprep.subr.mxu1 %v2255_v9 }
 0x38f   :  { %2119 = vmatprep.subr.mxu0 %v2255_v9  ;;  %2153 = vmatpush3.msra.mxu1 %v3854_v44 }
 0x390   :  { %2120 = vmatpush3.msra.mxu0 %v3854_v44  ;;  %2154 = vmatprep.subr.mxu1 %v2255_v9 }
 0x391   :  { %2155 = vmatpush3.msra.mxu1 %v3854_v44  ;;  %2121 = vmatprep.mubr.msk.f32.mxu0 %vm2256_vm1, %v2255_v9 }
 0x392   :  { %2156 = vmatprep.mubr.msk.f32.mxu1 %vm2256_vm1, %v2255_v9  ;;  %v1711_v9 = vlaneseq }
 0x394   :  { %v1712_v56 = vand.u32 127, %v1711_v9 }
 0x396   :  { %vm1713_vm2 = vcmp.lt.s32.totalorder %v1712_v56, 2 }
 0x426   :  { %v1415_v38 = vpop.f32.mrf.mxu0 }
 0x428   :  { %v1417_v5 = vpop.f32.mrf.mxu0  ;;  %v1486_v34 = vpop.f32.mrf.mxu1 }
 0x429   :  { %v1633_v33 = vadd.f32 %v1417_v5, %v1415_v38 }
 0x42a   :  { %v1488_v41 = vpop.f32.mrf.mxu1 }
 0x42b   :  { %v1634_v25 = vadd.f32 %v1633_v33, %v1486_v34 }
 0x42d   :  { %v1635_v42 = vadd.f32 %v1634_v25, %v1488_v41 }
 0x430   :  { %v1557_v2 = vpop.f32.mrf.mxu0 }
 0x431   :  { %v1636_v10 = vadd.f32 %v1635_v42, %v1557_v2  ;;  %v1628_v21 = vpop.f32.mrf.mxu1 }
 0x432   :  { %v1559_v43 = vpop.f32.mrf.mxu0 }
 0x433   :  { %v1637_v18 = vadd.f32 %v1636_v10, %v1559_v43  ;;  %v1630_v28 = vpop.f32.mrf.mxu1 }
 0x435   :  { %v1638_v39 = vadd.f32 %v1637_v18, %v1628_v21 }
 0x437   :  { %v1639_v32 = vadd.f32 %v1638_v39, %v1630_v28 }
 0x439   :  { %2122 = vmatmul.mubr.f32.vlgmr.msra.gmra.mxu0 %v1639_v32 }
 0x4f9   :  { %v1706_v53 = vpop.f32.mrf.mxu0 }
 0x4fa   :  { %v1710_v27 = vmul.f32 0.5, %v1706_v53 }
 0x4fb   :  { %v2123_v31 = vpop.f32.mrf.mxu0 }
 0x4fc   :  { %1716 = vperm.xlu1 %2169, %v1710_v27  }
 0x500   :  { %2171 = vset.pattern.permute.xlu1 %v2254_v62 }
 0x577   :  { %v1717_v29 = vpop.permute.xlu1 %1716 }
 0x578   :  { %v1719_v58 = vsub.f32 %v1639_v32, %v1717_v29 }
 0x57a   :  { %v1720_v35 = vsel %vm1713_vm2, %v1719_v58, 0.0 }
 0x57b   :  { %v1721_v45 = vmul.f32 %v1720_v35, %v1720_v35 }
 0x57d   :  { %2157 = vmatmul.mubr.f32.vlgmr.msra.gmra.mxu1 %v1721_v45 }
 0x63d   :  { %v1788_v54 = vpop.f32.mrf.mxu1 }
 0x63e   :  { %v1792_v57 = vmul.f32 0.5, %v1788_v54 }
 0x63f   :  { %v2158_v46 = vpop.f32.mrf.mxu1 }
 0x640   :  { %v1794_v48 = vadd.f32 1e-05, %v1792_v57 }
 0x642   :  { %2245 = vrsqrt.f32 %v1794_v48 }
 0x64f   :  { %v2246_v60 = vpop.eup %2245 }
 0x650   :  { %v1796_v7 = vmul.f32 %v2246_v60, %v1793_v22 }
 0x652   :  { %1805 = vperm.xlu0 %2170, %v1796_v7   ;;  %v1797_v12 = vmul.f32 %v1796_v7, %v1710_v27 }
 0x654   :  { %1799 = vrot.lane.b32.xlu1 %v1797_v12, %s2253_s18 }
 0x656   :  { %2172 = vset.pattern.permute.xlu0 %v2254_v62 }
 0x6c6   :  { %v1800_v37 = vpop.permute.xlu1 %1799 }
 0x6c7   :  { %v1802_v16 = vsub.f32 %v1793_v22, %v1800_v37 }
 0x6c9   :  { %1811 = vperm.xlu1 %2171, %v1802_v16  }
 0x6cd   :  { %v1806_v11 = vpop.permute.xlu0 %1805 }
 0x6ce   :  { %v1808_v44 = vmul.f32 %v1806_v11, %v1639_v32 }
 0x744   :  { %v1812_v0 = vpop.permute.xlu1 %1811 }
 0x745   :  { %v1814_v3 = vadd.f32 %v1812_v0, %v1808_v44 }
 0x747   :  { %v1830_v4 = vmul.f32 -1.442695, %v1814_v3 }
 0x749   :  { %2247 = vpow2.f32 %v1830_v4 }
 0x756   :  { %v2248_v47 = vpop.eup %2247 }
 0x757   :  { %v1818_v13 = vadd.f32 1.0, %v2248_v47 }
 0x759   :  { %2249 = vrcp.f32 %v1818_v13 }
 0x766   :  { %v2250_v6 = vpop.eup %2249 }
 0x767   :  { %1821 = vst [vmem:[%s3764_s4] sm:$0x1] %v2250_v6 }

</bundles_post_ra>
